<compile_context>
chip_gen: v7x
topology: tpu7x:2x2x1
jax: 0.10.0
libtpu: 0.0.40
codegen_flags: <defaults>
</compile_context>

<pallas_src>
import jax
import jax.numpy as jnp
from jax.experimental import pallas as pl
from jax.experimental.pallas import tpu as pltpu

CPAD = 128    # 96-channel dims padded to 128 lanes
C2PAD = 256   # 192-channel conv3 input padded to 256 lanes


# ----------------------------- Pallas kernels ------------------------------

def _fused_aff_mean_kernel(e2_ref, r_ref, interp_ref,
                           w3_ref, b3_ref,
                           wl1_ref, bl1_ref, wl2_ref, bl2_ref,
                           wg1_ref, bg1_ref, wg2_ref, bg2_ref,
                           o_ref, xup_s, xa_s):
    """One batch element per grid step.

    e2_ref:     (1, S0, C2PAD) bf16   low-res features (conv3 input)
    r_ref:      (1, S,  CPAD)  f32    residual e3 (channels-last, padded)
    interp_ref: (S, S0)        bf16   composed 4x bilinear interpolation matrix
    o_ref:      (1, 1, CPAD)   f32    per-batch spatial mean of AFF output
    xup_s:      (S, CPAD) f32 scratch, xa_s: (S, CPAD) bf16 scratch
    """
    f32, bf16 = jnp.float32, jnp.bfloat16

    # --- conv3 (1x1) on the low-res tile, then the 4x bilinear upsample as a matmul ---
    x16 = jnp.dot(e2_ref[0], w3_ref[...], preferred_element_type=f32) + b3_ref[...]
    xup_s[...] = jnp.dot(interp_ref[...], x16.astype(bf16), preferred_element_type=f32)

    # --- xa = x + residual, parked in a bf16 scratch (matmul operand; nothing big stays live) ---
    xa_s[...] = (xup_s[...] + r_ref[0]).astype(bf16)

    # --- global attention branch first: only a (1, C) row survives it ---
    g = jnp.mean(xa_s[...].astype(f32), axis=0, keepdims=True)
    hg = jnp.maximum(
        jnp.dot(g.astype(bf16), wg1_ref[...], preferred_element_type=f32) + bg1_ref[...], 0.0)
    xg = jnp.dot(hg.astype(bf16), wg2_ref[...], preferred_element_type=f32) + bg2_ref[...]

    # --- local attention branch ---
    hl = jnp.maximum(
        jnp.dot(xa_s[...], wl1_ref[...], preferred_element_type=f32) + bl1_ref[...], 0.0)
    xl = jnp.dot(hl.astype(bf16), wl2_ref[...], preferred_element_type=f32) + bl2_ref[...]

    # --- gate + blend + spatial mean; x_up / residual re-loaded from VMEM, not held live ---
    wei = jax.nn.sigmoid(xl + xg)                         # f32 elementwise (v5e-safe)
    f4 = 2.0 * xup_s[...] * wei + 2.0 * r_ref[0] * (1.0 - wei)
    # mean(upsample2x(f4)) == mean(f4) exactly -> emit only the mean.
    o_ref[0] = jnp.mean(f4, axis=0, keepdims=True)        # (1, CPAD)


def fused_aff_mean(e2p, e3p, interp, pp):
    """conv3 + 4x upsample + AFF + spatial mean fused; one batch element per grid step."""
    B, S0, C2 = e2p.shape
    _, S, C = e3p.shape
    Ci = pp["wl1"].shape[1]      # == CPAD after padding

    def full(shape):
        return pl.BlockSpec(shape, lambda b, _s=shape: (0,) * len(_s))

    out = pl.pallas_call(
        _fused_aff_mean_kernel,
        out_shape=jax.ShapeDtypeStruct((B, 1, C), jnp.float32),
        grid=(B,),
        in_specs=[
            pl.BlockSpec((1, S0, C2), lambda b: (b, 0, 0)),
            pl.BlockSpec((1, S, C), lambda b: (b, 0, 0)),
            full((S, S0)),
            full((C2, C)), full((1, C)),
            full((C, Ci)), full((1, Ci)),
            full((Ci, C)), full((1, C)),
            full((C, Ci)), full((1, Ci)),
            full((Ci, C)), full((1, C)),
        ],
        out_specs=pl.BlockSpec((1, 1, C), lambda b: (b, 0, 0)),
        scratch_shapes=[pltpu.VMEM((S, C), jnp.float32),
                        pltpu.VMEM((S, C), jnp.bfloat16)],
        compiler_params=pltpu.CompilerParams(dimension_semantics=("parallel",)),
    )(e2p, e3p, interp,
      pp["conv3_w"], pp["conv3_b"],
      pp["wl1"], pp["bl1"], pp["wl2"], pp["bl2"],
      pp["wg1"], pp["bg1"], pp["wg2"], pp["bg2"])
    return out.reshape(B, C)


def _erf_poly(x):
    # Abramowitz & Stegun 7.1.26 rational approximation of erf (max abs error ~1.5e-7).
    p = 0.3275911
    a1, a2, a3, a4, a5 = 0.254829592, -0.284496736, 1.421413741, -1.453152027, 1.061405429
    ax = jnp.abs(x)
    t = 1.0 / (1.0 + p * ax)
    poly = ((((a5 * t + a4) * t + a3) * t + a2) * t + a1) * t
    y = 1.0 - poly * jnp.exp(-(ax * ax))
    return jnp.where(x < 0.0, -y, y)


def _gelu_exact(x):
    # exact-erf GELU (nn.GELU default); erf error 1.5e-7 is far below the test tolerance
    return 0.5 * x * (1.0 + _erf_poly(x * 0.7071067811865476))


def _tail_kernel(m_ref, w1_ref, b1_ref, w2_ref, b2_ref, o_ref):
    # (B, CPAD) means -> fc1 -> GELU(erf) -> fc2, whole batch in one grid step
    m = m_ref[...].astype(jnp.bfloat16)
    h = jnp.dot(m, w1_ref[...], preferred_element_type=jnp.float32) + b1_ref[...]
    h = _gelu_exact(h)
    o_ref[...] = jnp.dot(h.astype(jnp.bfloat16), w2_ref[...],
                         preferred_element_type=jnp.float32) + b2_ref[...]


def tail_fc(m, w1, b1, w2, b2):
    """Fused fc1 -> exact GELU -> fc2 on the (B, CPAD) means. Single grid step (no redundant fc1)."""
    B, C = m.shape
    Hd = w1.shape[1]
    Od = w2.shape[1]
    return pl.pallas_call(
        _tail_kernel,
        out_shape=jax.ShapeDtypeStruct((B, Od), jnp.float32),
        grid=(1,),
        in_specs=[
            pl.BlockSpec((B, C), lambda i: (0, 0)),
            pl.BlockSpec((C, Hd), lambda i: (0, 0)),
            pl.BlockSpec((1, Hd), lambda i: (0, 0)),
            pl.BlockSpec((Hd, Od), lambda i: (0, 0)),
            pl.BlockSpec((1, Od), lambda i: (0, 0)),
        ],
        out_specs=pl.BlockSpec((B, Od), lambda i: (0, 0)),
    )(m, w1, b1, w2, b2)


# ----------------------------- plain-JAX glue -------------------------------

def _up2_matrix(n):
    """(2n, n) matrix of one exact 2x bilinear upsample (align_corners=False, clamped)."""
    i = jnp.arange(n)
    prev = jnp.clip(i - 1, 0, n - 1)
    nxt = jnp.clip(i + 1, 0, n - 1)
    m = jnp.zeros((2 * n, n), jnp.float32)
    m = m.at[2 * i, prev].add(0.25)
    m = m.at[2 * i, i].add(0.75)
    m = m.at[2 * i + 1, i].add(0.75)
    m = m.at[2 * i + 1, nxt].add(0.25)
    return m


def _up4_matrix(n):
    """(4n, n) matrix of two composed 2x bilinear upsamples along one axis."""
    return _up2_matrix(2 * n) @ _up2_matrix(n)


def _up1d(a, axis):
    """Exact 2x bilinear upsample along `axis` (reference path only)."""
    n = a.shape[axis]
    idx = jnp.arange(n)
    a_prev = jnp.take(a, jnp.clip(idx - 1, 0, n - 1), axis=axis)
    a_next = jnp.take(a, jnp.clip(idx + 1, 0, n - 1), axis=axis)
    even = 0.25 * a_prev + 0.75 * a
    odd = 0.75 * a + 0.25 * a_next
    out = jnp.stack([even, odd], axis=axis + 1)
    shape = list(a.shape)
    shape[axis] = 2 * n
    return out.reshape(shape)


def upsample2x_bilinear_nhwc(x):
    return _up1d(_up1d(x, 1), 2)


def _pad2(w, r, c):
    return jnp.pad(w, ((0, r - w.shape[0]), (0, c - w.shape[1])))


def _pad1(b, n):
    return jnp.pad(b, (0, n - b.shape[0]))


def _pad_params(p, cp=CPAD, c2p=C2PAD):
    """Zero-pad channel dims to lane-dense sizes; matmul weights -> bf16 (biases stay f32)."""
    bf = jnp.bfloat16
    hd = p["fc1_w"].shape[1]
    od = p["fc2_w"].shape[1]
    return {
        "conv3_w": _pad2(p["conv3_w"], c2p, cp).astype(bf),
        "conv3_b": _pad1(p["conv3_b"], cp).reshape(1, cp),
        "wl1": _pad2(p["wl1"], cp, cp).astype(bf), "bl1": _pad1(p["bl1"], cp).reshape(1, cp),
        "wl2": _pad2(p["wl2"], cp, cp).astype(bf), "bl2": _pad1(p["bl2"], cp).reshape(1, cp),
        "wg1": _pad2(p["wg1"], cp, cp).astype(bf), "bg1": _pad1(p["bg1"], cp).reshape(1, cp),
        "wg2": _pad2(p["wg2"], cp, cp).astype(bf), "bg2": _pad1(p["bg2"], cp).reshape(1, cp),
        "fc1_w": _pad2(p["fc1_w"], cp, hd).astype(bf), "fc1_b": p["fc1_b"].reshape(1, hd),
        "fc2_w": p["fc2_w"].astype(bf), "fc2_b": p["fc2_b"].reshape(1, od),
    }


def init_params(key):
    C, Ci = 96, 24
    Hd, Od = 256 * 4, 256
    ks = jax.random.split(key, 32)
    it = iter(ks)

    def w(shape, scale=0.05):
        return jax.random.normal(next(it), shape, dtype=jnp.float32) * scale

    def bn(c):
        gamma = 1.0 + 0.1 * jax.random.normal(next(it), (c,), dtype=jnp.float32)
        beta = 0.1 * jax.random.normal(next(it), (c,), dtype=jnp.float32)
        mean = 0.1 * jax.random.normal(next(it), (c,), dtype=jnp.float32)
        var = jax.random.uniform(next(it), (c,), dtype=jnp.float32, minval=0.5, maxval=1.5)
        return gamma, beta, mean, var

    def fold(wm, b, bn_params, eps=1e-5):
        gamma, beta, mean, var = bn_params
        scale = gamma / jnp.sqrt(var + eps)
        return wm * scale[None, :], (b - mean) * scale + beta

    params = {}
    params["conv3_w"] = w((192, C))          # 1x1 conv, stored (Cin, Cout)
    params["conv3_b"] = w((C,))
    wl1, bl1 = fold(w((C, Ci)), w((Ci,)), bn(Ci))
    wl2, bl2 = fold(w((Ci, C)), w((C,)), bn(C))
    wg1, bg1 = fold(w((C, Ci)), w((Ci,)), bn(Ci))
    wg2, bg2 = fold(w((Ci, C)), w((C,)), bn(C))
    params.update(wl1=wl1, bl1=bl1, wl2=wl2, bl2=bl2,
                  wg1=wg1, bg1=bg1, wg2=wg2, bg2=bg2)
    params["fc1_w"] = w((C, Hd))
    params["fc1_b"] = w((Hd,))
    params["fc2_w"] = w((Hd, Od))
    params["fc2_b"] = w((Od,))
    return params


def bin_width_generation_aff_forward(e2_nchw, e3_nchw, p):
    # PyTorch NCHW -> channels-last for the kernels
    e2 = jnp.transpose(e2_nchw, (0, 2, 3, 1)).astype(jnp.float32)   # (B, H, W, 192)
    e3 = jnp.transpose(e3_nchw, (0, 2, 3, 1)).astype(jnp.float32)   # (B, 4H, 4W, 96)
    B, H, W, C2 = e2.shape
    C = e3.shape[-1]
    H4, W4 = 4 * H, 4 * W
    pp = _pad_params(p)

    # Composed 4x (= 2x o 2x) bilinear interpolation as a fixed matrix (exact in bf16:
    # all entries are multiples of 1/256 with <= 8 significant bits).
    interp = jnp.kron(_up4_matrix(H), _up4_matrix(W)).astype(jnp.bfloat16)   # (H4*W4, H*W)

    # Lane-dense, zero-padded, channels-last inputs. conv3 input in bf16 (matmul-only),
    # the residual stays f32 (used in f32 elementwise math inside the kernel).
    e2p = jnp.pad(e2, ((0, 0), (0, 0), (0, 0), (0, C2PAD - C2)))
    e2p = e2p.reshape(B, H * W, C2PAD).astype(jnp.bfloat16)
    e3p = jnp.pad(e3, ((0, 0), (0, 0), (0, 0), (0, CPAD - C))).reshape(B, H4 * W4, CPAD)

    # Fused conv3 + 4x upsample + AFF + spatial mean (f3c / x_up / f4 never touch HBM).
    means = fused_aff_mean(e2p, e3p, interp, pp)                    # (B, CPAD)

    # Fused tail: fc1 -> exact-erf GELU -> fc2 (single grid step, fc1 computed once).
    return tail_fc(means, pp["fc1_w"], pp["fc1_b"], pp["fc2_w"], pp["fc2_b"])   # (B, 256)


# ----------------------------- pure-JAX reference ---------------------------

def reference_forward(e2_nchw, e3_nchw, p):
    # faithful to the module's op order: upsample -> conv3 -> upsample -> AFF -> upsample -> mean
    e2 = jnp.transpose(e2_nchw, (0, 2, 3, 1)).astype(jnp.float32)
    e3 = jnp.transpose(e3_nchw, (0, 2, 3, 1)).astype(jnp.float32)
    f3_up = upsample2x_bilinear_nhwc(e2)
    f3_conv = jnp.einsum("bhwc,cd->bhwd", f3_up, p["conv3_w"]) + p["conv3_b"]
    f3_conv_up = upsample2x_bilinear_nhwc(f3_conv)
    x, r = f3_conv_up, e3
    xa = x + r
    hl = jnp.maximum(jnp.einsum("bhwc,cd->bhwd", xa, p["wl1"]) + p["bl1"], 0.0)
    xl = jnp.einsum("bhwc,cd->bhwd", hl, p["wl2"]) + p["bl2"]
    g = jnp.mean(xa, axis=(1, 2), keepdims=True)
    hg = jnp.maximum(jnp.einsum("bhwc,cd->bhwd", g, p["wg1"]) + p["bg1"], 0.0)
    xg = jnp.einsum("bhwc,cd->bhwd", hg, p["wg2"]) + p["bg2"]
    wei = jax.nn.sigmoid(xl + xg)
    f4 = 2.0 * x * wei + 2.0 * r * (1.0 - wei)
    f4_up = upsample2x_bilinear_nhwc(f4)
    m = jnp.mean(f4_up, axis=(1, 2))
    h = jax.nn.gelu(m @ p["fc1_w"] + p["fc1_b"], approximate=False)
    return h @ p["fc2_w"] + p["fc2_b"]


# ----------------------------------- main ------------------------------------

if __name__ == "__main__":
    key = jax.random.PRNGKey(0)
    k_e2, k_e3, k_p = jax.random.split(key, 3)
    B = 2
    # e_list[2]: (B, 192, H, W) NCHW, e_list[3]: (B, 96, 4H, 4W) NCHW (as the module implies)
    e2 = jax.random.normal(k_e2, (B, 192, 4, 4), dtype=jnp.float32)
    e3 = jax.random.normal(k_e3, (B, 96, 16, 16), dtype=jnp.float32)
    params = init_params(k_p)

    out = bin_width_generation_aff_forward(e2, e3, params)
    out = jax.block_until_ready(out)
    assert out.shape == (B, 256), out.shape

    ref = reference_forward(e2, e3, params)
    max_err = float(jnp.max(jnp.abs(out - ref)))
    assert max_err < 5e-2, f"max abs error vs reference too large: {max_err}"
    print("KERNEL_OK")
</pallas_src>

<mosaic_0001>
module attributes {stable_mosaic.version = 11 : i64} {
  func.func @_fused_aff_mean_kernel(%arg0: i32, %arg1: memref<1x16x256xbf16, #tpu.memory_space<vmem>>, %arg2: memref<1x256x128xf32, #tpu.memory_space<vmem>>, %arg3: memref<256x16xbf16, #tpu.memory_space<vmem>>, %arg4: memref<256x128xbf16, #tpu.memory_space<vmem>>, %arg5: memref<1x128xf32, #tpu.memory_space<vmem>>, %arg6: memref<128x128xbf16, #tpu.memory_space<vmem>>, %arg7: memref<1x128xf32, #tpu.memory_space<vmem>>, %arg8: memref<128x128xbf16, #tpu.memory_space<vmem>>, %arg9: memref<1x128xf32, #tpu.memory_space<vmem>>, %arg10: memref<128x128xbf16, #tpu.memory_space<vmem>>, %arg11: memref<1x128xf32, #tpu.memory_space<vmem>>, %arg12: memref<128x128xbf16, #tpu.memory_space<vmem>>, %arg13: memref<1x128xf32, #tpu.memory_space<vmem>>, %arg14: memref<1x1x128xf32, #tpu.memory_space<vmem>>, %arg15: memref<256x128xf32, #tpu.memory_space<vmem>>, %arg16: memref<256x128xbf16, #tpu.memory_space<vmem>>) attributes {dimension_semantics = [#tpu.dimension_semantics<parallel>], iteration_bounds = array<i64: 2>, scalar_prefetch = 0 : i64, scratch_operands = 2 : i64, tpu.core_type = #tpu.core_type<tc>, window_params = [{transform_indices = @transform_0, window_bounds = array<i64: 1, 16, 256>}, {transform_indices = @transform_1, window_bounds = array<i64: 1, 256, 128>}, {pipeline_mode = #tpu.pipeline_mode<synchronous>, transform_indices = @transform_2, window_bounds = array<i64: 256, 16>}, {pipeline_mode = #tpu.pipeline_mode<synchronous>, transform_indices = @transform_3, window_bounds = array<i64: 256, 128>}, {pipeline_mode = #tpu.pipeline_mode<synchronous>, transform_indices = @transform_4, window_bounds = array<i64: 1, 128>}, {pipeline_mode = #tpu.pipeline_mode<synchronous>, transform_indices = @transform_5, window_bounds = array<i64: 128, 128>}, {pipeline_mode = #tpu.pipeline_mode<synchronous>, transform_indices = @transform_6, window_bounds = array<i64: 1, 128>}, {pipeline_mode = #tpu.pipeline_mode<synchronous>, transform_indices = @transform_7, window_bounds = array<i64: 128, 128>}, {pipeline_mode = #tpu.pipeline_mode<synchronous>, transform_indices = @transform_8, window_bounds = array<i64: 1, 128>}, {pipeline_mode = #tpu.pipeline_mode<synchronous>, transform_indices = @transform_9, window_bounds = array<i64: 128, 128>}, {pipeline_mode = #tpu.pipeline_mode<synchronous>, transform_indices = @transform_10, window_bounds = array<i64: 1, 128>}, {pipeline_mode = #tpu.pipeline_mode<synchronous>, transform_indices = @transform_11, window_bounds = array<i64: 128, 128>}, {pipeline_mode = #tpu.pipeline_mode<synchronous>, transform_indices = @transform_12, window_bounds = array<i64: 1, 128>}, {transform_indices = @transform_13, window_bounds = array<i64: 1, 1, 128>}]} {
    %c0 = arith.constant 0 : index
    %c0_0 = arith.constant 0 : index
    %c0_1 = arith.constant 0 : index
    %0 = vector.load %arg1[%c0, %c0_0, %c0_1] : memref<1x16x256xbf16, #tpu.memory_space<vmem>>, vector<1x16x256xbf16>
    %1 = vector.shape_cast %0 : vector<1x16x256xbf16> to vector<16x256xbf16>
    %c0_2 = arith.constant 0 : index
    %c0_3 = arith.constant 0 : index
    %2 = vector.load %arg4[%c0_2, %c0_3] : memref<256x128xbf16, #tpu.memory_space<vmem>>, vector<256x128xbf16>
    %cst = arith.constant dense<0.000000e+00> : vector<16x128xf32>
    %3 = tpu.matmul %1, %2, %cst {dimension_numbers = #tpu.dot_dimension_numbers<[1], [0], [0], [1], [0, 0, 1, 1], [], []>} : vector<16x256xbf16>, vector<256x128xbf16>, vector<16x128xf32> -> vector<16x128xf32>
    %c0_4 = arith.constant 0 : index
    %c0_5 = arith.constant 0 : index
    %4 = vector.load %arg5[%c0_4, %c0_5] : memref<1x128xf32, #tpu.memory_space<vmem>>, vector<1x128xf32>
    %5 = vector.broadcast %4 : vector<1x128xf32> to vector<16x128xf32>
    %6 = arith.addf %3, %5 : vector<16x128xf32>
    %c0_6 = arith.constant 0 : index
    %c0_7 = arith.constant 0 : index
    %7 = vector.load %arg3[%c0_6, %c0_7] : memref<256x16xbf16, #tpu.memory_space<vmem>>, vector<256x16xbf16>
    %8 = arith.truncf %6 : vector<16x128xf32> to vector<16x128xbf16>
    %cst_8 = arith.constant dense<0.000000e+00> : vector<256x128xf32>
    %9 = tpu.matmul %7, %8, %cst_8 {dimension_numbers = #tpu.dot_dimension_numbers<[1], [0], [0], [1], [0, 0, 1, 1], [], []>} : vector<256x16xbf16>, vector<16x128xbf16>, vector<256x128xf32> -> vector<256x128xf32>
    %c0_9 = arith.constant 0 : index
    %c0_10 = arith.constant 0 : index
    %10 = vector.load %arg15[%c0_9, %c0_10] : memref<256x128xf32, #tpu.memory_space<vmem>>, vector<256x128xf32>
    tpu.vector_store %arg15[%c0_9, %c0_10], %9 {strides = array<i32>} : memref<256x128xf32, #tpu.memory_space<vmem>>, vector<256x128xf32>,
    %c0_11 = arith.constant 0 : index
    %c0_12 = arith.constant 0 : index
    %11 = vector.load %arg15[%c0_11, %c0_12] : memref<256x128xf32, #tpu.memory_space<vmem>>, vector<256x128xf32>
    %c0_13 = arith.constant 0 : index
    %c0_14 = arith.constant 0 : index
    %c0_15 = arith.constant 0 : index
    %12 = vector.load %arg2[%c0_13, %c0_14, %c0_15] : memref<1x256x128xf32, #tpu.memory_space<vmem>>, vector<1x256x128xf32>
    %13 = vector.shape_cast %12 : vector<1x256x128xf32> to vector<256x128xf32>
    %14 = arith.addf %11, %13 : vector<256x128xf32>
    %15 = arith.truncf %14 : vector<256x128xf32> to vector<256x128xbf16>
    %c0_16 = arith.constant 0 : index
    %c0_17 = arith.constant 0 : index
    %16 = vector.load %arg16[%c0_16, %c0_17] : memref<256x128xbf16, #tpu.memory_space<vmem>>, vector<256x128xbf16>
    tpu.vector_store %arg16[%c0_16, %c0_17], %15 {strides = array<i32>} : memref<256x128xbf16, #tpu.memory_space<vmem>>, vector<256x128xbf16>,
    %c0_18 = arith.constant 0 : index
    %c0_19 = arith.constant 0 : index
    %17 = vector.load %arg16[%c0_18, %c0_19] : memref<256x128xbf16, #tpu.memory_space<vmem>>, vector<256x128xbf16>
    %18 = arith.extf %17 : vector<256x128xbf16> to vector<256x128xf32>
    %cst_20 = arith.constant dense<0.000000e+00> : vector<128xf32>
    %19 = vector.multi_reduction <add>, %18, %cst_20 [0] : vector<256x128xf32> to vector<128xf32>
    %20 = vector.shape_cast %19 : vector<128xf32> to vector<1x128xf32>
    %cst_21 = arith.constant 2.560000e+02 : f32
    %21 = vector.broadcast %cst_21 : f32 to vector<1x128xf32>
    %22 = arith.divf %20, %21 : vector<1x128xf32>
    %23 = arith.truncf %22 : vector<1x128xf32> to vector<1x128xbf16>
    %c0_22 = arith.constant 0 : index
    %c0_23 = arith.constant 0 : index
    %24 = vector.load %arg10[%c0_22, %c0_23] : memref<128x128xbf16, #tpu.memory_space<vmem>>, vector<128x128xbf16>
    %cst_24 = arith.constant dense<0.000000e+00> : vector<1x128xf32>
    %25 = tpu.matmul %23, %24, %cst_24 {dimension_numbers = #tpu.dot_dimension_numbers<[1], [0], [0], [1], [0, 0, 1, 1], [], []>} : vector<1x128xbf16>, vector<128x128xbf16>, vector<1x128xf32> -> vector<1x128xf32>
    %c0_25 = arith.constant 0 : index
    %c0_26 = arith.constant 0 : index
    %26 = vector.load %arg11[%c0_25, %c0_26] : memref<1x128xf32, #tpu.memory_space<vmem>>, vector<1x128xf32>
    %27 = arith.addf %25, %26 : vector<1x128xf32>
    %cst_27 = arith.constant 0.000000e+00 : f32
    %28 = vector.broadcast %cst_27 : f32 to vector<1x128xf32>
    %29 = arith.maximumf %27, %28 : vector<1x128xf32>
    %30 = arith.truncf %29 : vector<1x128xf32> to vector<1x128xbf16>
    %c0_28 = arith.constant 0 : index
    %c0_29 = arith.constant 0 : index
    %31 = vector.load %arg12[%c0_28, %c0_29] : memref<128x128xbf16, #tpu.memory_space<vmem>>, vector<128x128xbf16>
    %cst_30 = arith.constant dense<0.000000e+00> : vector<1x128xf32>
    %32 = tpu.matmul %30, %31, %cst_30 {dimension_numbers = #tpu.dot_dimension_numbers<[1], [0], [0], [1], [0, 0, 1, 1], [], []>} : vector<1x128xbf16>, vector<128x128xbf16>, vector<1x128xf32> -> vector<1x128xf32>
    %c0_31 = arith.constant 0 : index
    %c0_32 = arith.constant 0 : index
    %33 = vector.load %arg13[%c0_31, %c0_32] : memref<1x128xf32, #tpu.memory_space<vmem>>, vector<1x128xf32>
    %34 = arith.addf %32, %33 : vector<1x128xf32>
    %c0_33 = arith.constant 0 : index
    %c0_34 = arith.constant 0 : index
    %35 = vector.load %arg16[%c0_33, %c0_34] : memref<256x128xbf16, #tpu.memory_space<vmem>>, vector<256x128xbf16>
    %c0_35 = arith.constant 0 : index
    %c0_36 = arith.constant 0 : index
    %36 = vector.load %arg6[%c0_35, %c0_36] : memref<128x128xbf16, #tpu.memory_space<vmem>>, vector<128x128xbf16>
    %cst_37 = arith.constant dense<0.000000e+00> : vector<256x128xf32>
    %37 = tpu.matmul %35, %36, %cst_37 {dimension_numbers = #tpu.dot_dimension_numbers<[1], [0], [0], [1], [0, 0, 1, 1], [], []>} : vector<256x128xbf16>, vector<128x128xbf16>, vector<256x128xf32> -> vector<256x128xf32>
    %c0_38 = arith.constant 0 : index
    %c0_39 = arith.constant 0 : index
    %38 = vector.load %arg7[%c0_38, %c0_39] : memref<1x128xf32, #tpu.memory_space<vmem>>, vector<1x128xf32>
    %39 = vector.broadcast %38 : vector<1x128xf32> to vector<256x128xf32>
    %40 = arith.addf %37, %39 : vector<256x128xf32>
    %cst_40 = arith.constant 0.000000e+00 : f32
    %41 = vector.broadcast %cst_40 : f32 to vector<256x128xf32>
    %42 = arith.maximumf %40, %41 : vector<256x128xf32>
    %43 = arith.truncf %42 : vector<256x128xf32> to vector<256x128xbf16>
    %c0_41 = arith.constant 0 : index
    %c0_42 = arith.constant 0 : index
    %44 = vector.load %arg8[%c0_41, %c0_42] : memref<128x128xbf16, #tpu.memory_space<vmem>>, vector<128x128xbf16>
    %cst_43 = arith.constant dense<0.000000e+00> : vector<256x128xf32>
    %45 = tpu.matmul %43, %44, %cst_43 {dimension_numbers = #tpu.dot_dimension_numbers<[1], [0], [0], [1], [0, 0, 1, 1], [], []>} : vector<256x128xbf16>, vector<128x128xbf16>, vector<256x128xf32> -> vector<256x128xf32>
    %c0_44 = arith.constant 0 : index
    %c0_45 = arith.constant 0 : index
    %46 = vector.load %arg9[%c0_44, %c0_45] : memref<1x128xf32, #tpu.memory_space<vmem>>, vector<1x128xf32>
    %47 = vector.broadcast %46 : vector<1x128xf32> to vector<256x128xf32>
    %48 = arith.addf %45, %47 : vector<256x128xf32>
    %49 = vector.broadcast %34 : vector<1x128xf32> to vector<256x128xf32>
    %50 = arith.addf %48, %49 : vector<256x128xf32>
    %51 = arith.negf %50 : vector<256x128xf32>
    %52 = math.exp %51 : vector<256x128xf32>
    %cst_46 = arith.constant 1.000000e+00 : f32
    %53 = vector.broadcast %cst_46 : f32 to vector<256x128xf32>
    %54 = arith.addf %53, %52 : vector<256x128xf32>
    %55 = arith.divf %53, %54 : vector<256x128xf32>
    %c0_47 = arith.constant 0 : index
    %c0_48 = arith.constant 0 : index
    %56 = vector.load %arg15[%c0_47, %c0_48] : memref<256x128xf32, #tpu.memory_space<vmem>>, vector<256x128xf32>
    %cst_49 = arith.constant 2.000000e+00 : f32
    %57 = vector.broadcast %cst_49 : f32 to vector<256x128xf32>
    %58 = arith.mulf %57, %56 : vector<256x128xf32>
    %59 = arith.mulf %58, %55 : vector<256x128xf32>
    %c0_50 = arith.constant 0 : index
    %c0_51 = arith.constant 0 : index
    %c0_52 = arith.constant 0 : index
    %60 = vector.load %arg2[%c0_50, %c0_51, %c0_52] : memref<1x256x128xf32, #tpu.memory_space<vmem>>, vector<1x256x128xf32>
    %61 = vector.shape_cast %60 : vector<1x256x128xf32> to vector<256x128xf32>
    %cst_53 = arith.constant 2.000000e+00 : f32
    %62 = vector.broadcast %cst_53 : f32 to vector<256x128xf32>
    %63 = arith.mulf %62, %61 : vector<256x128xf32>
    %cst_54 = arith.constant 1.000000e+00 : f32
    %64 = vector.broadcast %cst_54 : f32 to vector<256x128xf32>
    %65 = arith.subf %64, %55 : vector<256x128xf32>
    %66 = arith.mulf %63, %65 : vector<256x128xf32>
    %67 = arith.addf %59, %66 : vector<256x128xf32>
    %cst_55 = arith.constant dense<0.000000e+00> : vector<128xf32>
    %68 = vector.multi_reduction <add>, %67, %cst_55 [0] : vector<256x128xf32> to vector<128xf32>
    %69 = vector.shape_cast %68 : vector<128xf32> to vector<1x128xf32>
    %cst_56 = arith.constant 2.560000e+02 : f32
    %70 = vector.broadcast %cst_56 : f32 to vector<1x128xf32>
    %71 = arith.divf %69, %70 : vector<1x128xf32>
    %c0_57 = arith.constant 0 : index
    %c0_58 = arith.constant 0 : index
    %c0_59 = arith.constant 0 : index
    %72 = vector.load %arg14[%c0_57, %c0_58, %c0_59] : memref<1x1x128xf32, #tpu.memory_space<vmem>>, vector<1x1x128xf32>
    %73 = vector.shape_cast %72 : vector<1x1x128xf32> to vector<1x128xf32>
    %74 = vector.shape_cast %71 : vector<1x128xf32> to vector<1x1x128xf32>
    tpu.vector_store %arg14[%c0_57, %c0_58, %c0_59], %74 {strides = array<i32>} : memref<1x1x128xf32, #tpu.memory_space<vmem>>, vector<1x1x128xf32>,
    return
  }
  func.func @transform_0(%arg0: i32) -> (i32, i32, i32) {
    %c0_i32 = arith.constant 0 : i32
    %c0_i32_0 = arith.constant 0 : i32
    %c0_i32_1 = arith.constant 0 : i32
    return %arg0, %c0_i32, %c0_i32_0 : i32, i32, i32
  }
  func.func @transform_1(%arg0: i32) -> (i32, i32, i32) {
    %c0_i32 = arith.constant 0 : i32
    %c0_i32_0 = arith.constant 0 : i32
    %c0_i32_1 = arith.constant 0 : i32
    return %arg0, %c0_i32, %c0_i32_0 : i32, i32, i32
  }
  func.func @transform_2(%arg0: i32) -> (i32, i32) {
    %c0_i32 = arith.constant 0 : i32
    %c0_i32_0 = arith.constant 0 : i32
    %c0_i32_1 = arith.constant 0 : i32
    return %c0_i32, %c0_i32_0 : i32, i32
  }
  func.func @transform_3(%arg0: i32) -> (i32, i32) {
    %c0_i32 = arith.constant 0 : i32
    %c0_i32_0 = arith.constant 0 : i32
    %c0_i32_1 = arith.constant 0 : i32
    return %c0_i32, %c0_i32_0 : i32, i32
  }
  func.func @transform_4(%arg0: i32) -> (i32, i32) {
    %c0_i32 = arith.constant 0 : i32
    %c0_i32_0 = arith.constant 0 : i32
    %c0_i32_1 = arith.constant 0 : i32
    return %c0_i32, %c0_i32_0 : i32, i32
  }
  func.func @transform_5(%arg0: i32) -> (i32, i32) {
    %c0_i32 = arith.constant 0 : i32
    %c0_i32_0 = arith.constant 0 : i32
    %c0_i32_1 = arith.constant 0 : i32
    return %c0_i32, %c0_i32_0 : i32, i32
  }
  func.func @transform_6(%arg0: i32) -> (i32, i32) {
    %c0_i32 = arith.constant 0 : i32
    %c0_i32_0 = arith.constant 0 : i32
    %c0_i32_1 = arith.constant 0 : i32
    return %c0_i32, %c0_i32_0 : i32, i32
  }
  func.func @transform_7(%arg0: i32) -> (i32, i32) {
    %c0_i32 = arith.constant 0 : i32
    %c0_i32_0 = arith.constant 0 : i32
    %c0_i32_1 = arith.constant 0 : i32
    return %c0_i32, %c0_i32_0 : i32, i32
  }
  func.func @transform_8(%arg0: i32) -> (i32, i32) {
    %c0_i32 = arith.constant 0 : i32
    %c0_i32_0 = arith.constant 0 : i32
    %c0_i32_1 = arith.constant 0 : i32
    return %c0_i32, %c0_i32_0 : i32, i32
  }
  func.func @transform_9(%arg0: i32) -> (i32, i32) {
    %c0_i32 = arith.constant 0 : i32
    %c0_i32_0 = arith.constant 0 : i32
    %c0_i32_1 = arith.constant 0 : i32
    return %c0_i32, %c0_i32_0 : i32, i32
  }
  func.func @transform_10(%arg0: i32) -> (i32, i32) {
    %c0_i32 = arith.constant 0 : i32
    %c0_i32_0 = arith.constant 0 : i32
    %c0_i32_1 = arith.constant 0 : i32
    return %c0_i32, %c0_i32_0 : i32, i32
  }
  func.func @transform_11(%arg0: i32) -> (i32, i32) {
    %c0_i32 = arith.constant 0 : i32
    %c0_i32_0 = arith.constant 0 : i32
    %c0_i32_1 = arith.constant 0 : i32
    return %c0_i32, %c0_i32_0 : i32, i32
  }
  func.func @transform_12(%arg0: i32) -> (i32, i32) {
    %c0_i32 = arith.constant 0 : i32
    %c0_i32_0 = arith.constant 0 : i32
    %c0_i32_1 = arith.constant 0 : i32
    return %c0_i32, %c0_i32_0 : i32, i32
  }
  func.func @transform_13(%arg0: i32) -> (i32, i32, i32) {
    %c0_i32 = arith.constant 0 : i32
    %c0_i32_0 = arith.constant 0 : i32
    %c0_i32_1 = arith.constant 0 : i32
    return %arg0, %c0_i32, %c0_i32_0 : i32, i32, i32
  }
}

</mosaic_0001>

<bundles_post_ra>
// kernel: tpu_custom_call.1
= control target key start
LH: loop header
LB: loop body
LE: loop exit
PB: predicated region body
PF: predicated region fallthrough
CT: control target
= control target key end

     0   :  { %s4770_s0 = inlined_call_operand.hbm [shape: bf16[2,16,256], index: 0, kind: input, shape index: {}]   ;;  %s4771_s1 = inlined_call_operand.hbm [shape: f32[2,256,128], index: 1, kind: input, shape index: {}]   ;;  %s4772_s2 = inlined_call_operand.vmem [shape: bf16[256,16], index: 2, kind: input, shape index: {}]   ;;  %s4773_s3 = inlined_call_operand.vmem [shape: bf16[256,128], index: 3, kind: input, shape index: {}]   ;;  %s4774_s4 = inlined_call_operand.vmem [shape: f32[1,128], index: 4, kind: input, shape index: {}]   ;;  %s4775_s5 = inlined_call_operand.hbm [shape: bf16[128,128], index: 5, kind: input, shape index: {}]   ;;  %s4776_s6 = inlined_call_operand.vmem [shape: f32[1,128], index: 6, kind: input, shape index: {}]   ;;  %s4777_s7 = inlined_call_operand.hbm [shape: bf16[128,128], index: 7, kind: input, shape index: {}]   ;;  %s4778_s8 = inlined_call_operand.vmem [shape: f32[1,128], index: 8, kind: input, shape index: {}]   ;;  %s4779_s9 = inlined_call_operand.hbm [shape: bf16[128,128], index: 9, kind: input, shape index: {}]   ;;  %s4780_s10 = inlined_call_operand.vmem [shape: f32[1,128], index: 10, kind: input, shape index: {}]   ;;  %s4781_s11 = inlined_call_operand.hbm [shape: bf16[128,128], index: 11, kind: input, shape index: {}]   ;;  %s4782_s12 = inlined_call_operand.vmem [shape: f32[1,128], index: 12, kind: input, shape index: {}]   ;;  %s4783_s13 = inlined_call_operand.hbm [shape: f32[2,1,128], index: 13, kind: output, shape index: {}]  }
   0x1   :  { %4802 = sst [smem:[#allocation34_spill]] %s4770_s0 }
   0x2   :  { %4803 = sst [smem:[#allocation35_spill]] %s4775_s5 }
   0x3   :  { %4804 = sst [smem:[#allocation36_spill]] %s4776_s6 }
   0x4   :  { %4805 = sst [smem:[#allocation37_spill]] %s4777_s7 }
   0x5   :  { %4806 = sst [smem:[#allocation38_spill]] %s4778_s8 }
   0x6   :  { %4807 = sst [smem:[#allocation39_spill]] %s4779_s9 }
   0x7   :  { %4808 = sst [smem:[#allocation40_spill]] %s4780_s10 }
   0x8   :  { %4809 = sst [smem:[#allocation41_spill]] %s4782_s12 }
   0x9   :  { %4810 = sst [smem:[#allocation42_spill]] %s4783_s13 }
   0xa   :  { %18 = vsyncpa [#allocation5], 0 }
   0xb   :  { %20 = vsyncpa [#allocation5 + $0x1], 0 }
   0xc   :  { %21 = vsyncpa [#allocation8], 0 }
   0xd   :  { %23 = vsyncpa [#allocation8 + $0x1], 0 }
   0xe   :  { %24 = vsyncpa [#allocation11], 0 }
   0xf   :  { %25 = vsyncpa [#allocation14], 0 }
  0x10   :  { %26 = vsyncpa [#allocation6], 0 }
  0x11   :  { %28 = vsyncpa [#allocation6 + $0x1], 0  ;;  %s3752_s25 = smov 0   ;;  %s3754_s26 = smov 0  }
  0x12   :  { %s3756_s27 = smov 0   ;;  %s3758_s28 = smov 0  }
  0x13 LB: > { %4811 = sst [smem:[#allocation22_spill]] %s3655_s25  ;;  %s3773_s29 = sadd.s32 4294967295, %s3667_s28   ;;  %s3667_s28 = sphi %s3758_s28, %s4867_s28   ;;  %s3663_s27 = sphi %s3756_s27, %s4866_s27   ;;  %s3659_s26 = sphi %s3754_s26, %s4865_s26   ;;  %s3655_s25 = sphi %s3752_s25, %s4864_s25  }
  0x14   : > { %s2703_s30 = sadd.s32 4294967294, %s3667_s28   ;;  %p54_p0 = scmp.ne.s32.totalorder %s3659_s26, %s3655_s25 }
  0x15   : > { %p4787_p1 = scmp.eq.s32.totalorder %s3773_s29, 0  ;;  %p341_p3 = scmp.eq.s32.totalorder %s2703_s30, 1 }
  0x16   : > { %p2704_p5 = scmp.ge.s32.totalorder %s3667_s28, 1  ;;  %p348_p7 = scmp.lt.s32.totalorder %s3667_s28, 3 }
  0x17   : > { %p3782_p4 = por %p4787_p1, %p54_p0  ;;  %p3787_p6 = por %p341_p3, %p54_p0 }
  0x18   : > { %p3792_p8 = pnand %p2704_p5, %p348_p7  ;;  %s3669_s17 = smov [#allocation9]  }
  0x19   : > { %s4812_s14 = scalar_select %p3782_p4, 1, 0 }
  0x1a   : > { %s4813_s15 = scalar_select %p3787_p6, 1, 0 }
  0x1b   : > { %s4815_s16 = scalar_select %p3792_p8, 1, 0 }
  0x1c   : > { %4814 = sst [smem:[#allocation23_spill]] %s4813_s15  ;;  %s369_s18 = sshll.u32 %s3669_s17, 4  ;;  %s3796_s18 = int_to_ptr.vmem [resolvable:$true] %s369_s18 }
  0x1d   : > { %p3142_p9 = pneg %p3792_p8  ;;  %s3670_s20 = smov [#allocation10]  }
  0x1e   : > { %s385_s21 = sshll.u32 %s3670_s20, 4  ;;  %s3671_s22 = smov [#allocation12]   ;;  %s3807_s21 = int_to_ptr.vmem [resolvable:$true] %s385_s21 }
  0x1f   : > { %p3803_p11 = pnand %p3142_p9, %p4787_p1  ;;  %s3809_s23 = sshll.u32 %s3671_s22, 4  ;;  %s402_s23 = int_to_ptr.vmem [resolvable:$true] %s3809_s23 }
  0x20   : > { %s4817_s5 = sld [smem:[#allocation35_spill]] }
  0x21   : > { %p3819_p13 = pneg %p3803_p11 }
  0x26   : > { %s3413_s17 = scalar_lea.hbm %s4817_s5, 1024 }
  0x27   : > { %p3414_p12 = scmp.ne.s32.totalorder %s4817_s5, %s3413_s17  ;;  %p3420_p5 = scmp.lt.u32.totalorder %s3413_s17, %s4817_s5 }
  0x29   : > { %p3416_p0 = pnand %p3819_p13, %p3414_p12 }
  0x2b   : > { %p3417_p3 = pneg %p3416_p0 }
  0x2d   : > { %p3422_p7 = pnand %p3420_p5, %p3417_p3 }
  0x2f   : > { %3425 = shalt.err (!%p3422_p7)
}
  0x30   : > { %s3426_s25 = scalar_lea.vmem %s3796_s18, 1024  ;;  %p3434_p2 = scmp.lt.s32.totalorder %s3796_s18, %s3796_s18 }
  0x31   : > { %p3427_p9 = scmp.ne.s32.totalorder %s3796_s18, %s3426_s25  ;;  %p3435_p6 = scmp.lt.s32.totalorder %s3426_s25, %s3426_s25 }
  0x33   : > { %p3429_p10 = pnand %p3427_p9, %p3819_p13  ;;  %p3436_p12 = por %p3435_p6, %p3434_p2 }
  0x35   : > { %p3430_p1 = pneg %p3429_p10 }
  0x37   : > { %p3437_p0 = pnand %p3436_p12, %p3430_p1 }
  0x39   : > { %3440 = shalt.err (!%p3437_p0)
}
  0x3a   : > { %s3672_s15 = smov 64   ;;  %s3673_s24 = smov 4  }
  0x3b   : > { %3145 = dma.hbm_to_vmem [thread:$0]  (!%p3803_p11), %s4817_s5, 1024, %s3796_s18, [#allocation8], %s3672_s15, %s3672_s15, %s3673_s24  }
  0x3c   : > { %s4819_s7 = sld [smem:[#allocation37_spill]] }
  0x42   : > { %s3441_s25 = scalar_lea.hbm %s4819_s7, 1024 }
  0x43   : > { %p3442_p1 = scmp.ne.s32.totalorder %s4819_s7, %s3441_s25  ;;  %p3448_p10 = scmp.lt.u32.totalorder %s3441_s25, %s4819_s7 }
  0x45   : > { %p3444_p2 = pnand %p3442_p1, %p3819_p13 }
  0x47   : > { %p3445_p6 = pneg %p3444_p2 }
  0x49   : > { %p3450_p3 = pnand %p3448_p10, %p3445_p6 }
  0x4b   : > { %3453 = shalt.err (!%p3450_p3)
}
  0x4c   : > { %s3454_s18 = scalar_lea.vmem %s3807_s21, 1024  ;;  %p3462_p12 = scmp.lt.s32.totalorder %s3807_s21, %s3807_s21 }
  0x4d   : > { %p3455_p5 = scmp.ne.s32.totalorder %s3807_s21, %s3454_s18  ;;  %p3463_p0 = scmp.lt.s32.totalorder %s3454_s18, %s3454_s18 }
  0x4f   : > { %p3457_p7 = pnand %p3455_p5, %p3819_p13  ;;  %p3464_p1 = por %p3463_p0, %p3462_p12 }
  0x51   : > { %p3458_p9 = pneg %p3457_p7 }
  0x53   : > { %p3465_p2 = pnand %p3464_p1, %p3458_p9 }
  0x55   : > { %3468 = shalt.err (!%p3465_p2)
}
  0x56   : > { %3148 = dma.hbm_to_vmem [thread:$0]  (!%p3803_p11), %s4819_s7, 1024, %s3807_s21, [#allocation11], %s3672_s15, %s3672_s15, %s3673_s24  }
  0x57   : > { %s4820_s9 = sld [smem:[#allocation39_spill]] }
  0x5d   : > { %s3469_s30 = scalar_lea.hbm %s4820_s9, 1024 }
  0x5e   : > { %p3470_p6 = scmp.ne.s32.totalorder %s4820_s9, %s3469_s30  ;;  %p3476_p5 = scmp.lt.u32.totalorder %s3469_s30, %s4820_s9 }
  0x60   : > { %p3472_p10 = pnand %p3470_p6, %p3819_p13 }
  0x62   : > { %p3473_p3 = pneg %p3472_p10 }
  0x64   : > { %p3478_p7 = pnand %p3476_p5, %p3473_p3 }
  0x66   : > { %3481 = shalt.err (!%p3478_p7)
}
  0x67   : > { %s3482_s18 = scalar_lea.vmem %s402_s23, 1024  ;;  %p3490_p1 = scmp.lt.s32.totalorder %s402_s23, %s402_s23 }
  0x68   : > { %p3483_p9 = scmp.ne.s32.totalorder %s402_s23, %s3482_s18  ;;  %p3491_p2 = scmp.lt.s32.totalorder %s3482_s18, %s3482_s18 }
  0x6a   : > { %p3485_p12 = pnand %p3483_p9, %p3819_p13  ;;  %p3492_p4 = por %p3491_p2, %p3490_p1 }
  0x6c   : > { %p3486_p0 = pneg %p3485_p12 }
  0x6e   : > { %p3493_p8 = pnand %p3492_p4, %p3486_p0 }
  0x70   : > { %3496 = shalt.err (!%p3493_p8)
}
  0x71   : > { %3151 = dma.hbm_to_vmem [thread:$0]  (!%p3803_p11), %s4820_s9, 1024, %s402_s23, [#allocation11], %s3672_s15, %s3672_s15, %s3673_s24  }
  0x72   : > { %s3674_s8 = smov [#allocation13]   ;;  %s3497_s17 = scalar_lea.hbm %s4781_s11, 1024 }
  0x73   : > { %s417_s10 = sshll.u32 %s3674_s8, 4  ;;  %p3498_p4 = scmp.ne.s32.totalorder %s4781_s11, %s3497_s17  ;;  %s418_s10 = int_to_ptr.vmem [resolvable:$true] %s417_s10 }
  0x74   : > { %p3504_p10 = scmp.lt.u32.totalorder %s3497_s17, %s4781_s11 }
  0x75   : > { %p3500_p8 = pnand %p3498_p4, %p3819_p13 }
  0x77   : > { %p3501_p6 = pneg %p3500_p8 }
  0x79   : > { %p3506_p3 = pnand %p3504_p10, %p3501_p6 }
  0x7b   : > { %3509 = shalt.err (!%p3506_p3)
}
  0x7c   : > { %s3510_s23 = scalar_lea.vmem %s418_s10, 1024  ;;  %p3518_p12 = scmp.lt.s32.totalorder %s418_s10, %s418_s10 }
  0x7d   : > { %p3511_p5 = scmp.ne.s32.totalorder %s418_s10, %s3510_s23  ;;  %p3519_p0 = scmp.lt.s32.totalorder %s3510_s23, %s3510_s23 }
  0x7f   : > { %p3513_p7 = pnand %p3511_p5, %p3819_p13  ;;  %p3520_p1 = por %p3519_p0, %p3518_p12 }
  0x81   : > { %p3514_p9 = pneg %p3513_p7 }
  0x83   : > { %p3521_p2 = pnand %p3520_p1, %p3514_p9 }
  0x85   : > { %3524 = shalt.err (!%p3521_p2)
}
  0x86   : > { %3154 = dma.hbm_to_vmem [thread:$0]  (!%p3803_p11), %s4781_s11, 1024, %s418_s10, [#allocation14], %s3672_s15, %s3672_s15, %s3673_s24  }
  0x87   : > { %s3913_s13 = sadd.s32 1, %s3667_s28   ;;  %s41_s19 = sadd.s32 1, %s3663_s27 }
  0x88   : > { %s38_s8 = ssub.s32 %s3667_s28, %s3913_s13  ;;  %p48_p13 = scmp.ne.s32.totalorder %s3663_s27, %s3659_s26 }
  0x89   : > { %p39_p4 = scmp.eq.s32.totalorder %s38_s8, 0  ;;  %p49_p8 = scmp.eq.s32.totalorder %s3667_s28, 0 }
  0x8a   : > { %p4821_p6 = scmp.eq.s32.totalorder %s3773_s29, 1  ;;  %p3170_p3 = scmp.lt.s32.totalorder %s3667_s28, 2 }
  0x8b   : > { %s3929_s30 = scalar_select %p39_p4, %s3663_s27, %s41_s19  }
  0x8c   : > { %p3923_p10 = por %p4821_p6, %p48_p13  ;;  %p50_p5 = por %p49_p8, %p48_p13 }
  0x8d   : > { %s3932_s17 = sand.u32 1, %s3663_s27   ;;  %s2843_s24 = sshll.u32 %s3667_s28, 8 }
  0x8e   : > { %s2710_s15 = sshll.u32 %s3932_s17, 4  ;;  %s4823_s0 = sld [smem:[#allocation34_spill]] }
  0x8f   : > { %s438_s25 = scalar_lea.vmem [#allocation4], %s2710_s15  ;;  %p3943_p11 = pnand %p3170_p3, %p50_p5 }
  0x90   : > { %s445_s18 = sshll.u32 %s438_s25, 4  ;;  %s435_s6 = scalar_lea.sflag [#allocation5], %s3932_s17  ;;  %s3941_s18 = int_to_ptr.vmem [resolvable:$true] %s445_s18 }
  0x91   : > { %p3527_p9 = pneg %p3943_p11 }
  0x94   : > { %s3939_s22 = scalar_lea.hbm %s4823_s0, %s2843_s24  ;;  %s3530_s24 = scalar_lea.hbm %s4823_s0, 512 }
  0x95   : > { %s3525_s19 = scalar_lea.hbm %s3939_s22, 256  ;;  %p3531_p1 = scmp.lt.u32.totalorder %s3939_s22, %s4823_s0 }
  0x96   : > { %p3526_p7 = scmp.ne.s32.totalorder %s3939_s22, %s3525_s19  ;;  %p3532_p2 = scmp.lt.u32.totalorder %s3530_s24, %s3525_s19 }
  0x97   : > { %p3534_p4 = scmp.lt.u32.totalorder %s3525_s19, %s3939_s22 }
  0x98   : > { %p3528_p12 = pnand %p3527_p9, %p3526_p7  ;;  %p3533_p13 = por %p3532_p2, %p3531_p1 }
  0x9a   : > { %p3529_p0 = pneg %p3528_p12  ;;  %p3535_p8 = por %p3534_p4, %p3533_p13 }
  0x9c   : > { %p3536_p6 = pnand %p3535_p8, %p3529_p0 }
  0x9e   : > { %3539 = shalt.err (!%p3536_p6)
}
  0x9f   : > { %s3540_s25 = scalar_lea.vmem %s3941_s18, 256  ;;  %s3675_s8 = smov [#allocation4]  }
  0xa0   : > { %p3541_p3 = scmp.ne.s32.totalorder %s3941_s18, %s3540_s25  ;;  %s3545_s15 = sshll.u32 %s3675_s8, 4  ;;  %s3546_s15 = int_to_ptr.vmem [resolvable:$false] %s3545_s15 }
  0xa1   : > { %s3547_s10 = scalar_lea.vmem %s3546_s15, 512  ;;  %p3548_p12 = scmp.lt.s32.totalorder %s3941_s18, %s3546_s15 }
  0xa2   : > { %p3543_p5 = pnand %p3541_p3, %p3527_p9  ;;  %p3549_p1 = scmp.lt.s32.totalorder %s3547_s10, %s3540_s25 }
  0xa4   : > { %p3544_p7 = pneg %p3543_p5  ;;  %p3550_p2 = por %p3549_p1, %p3548_p12 }
  0xa6   : > { %p3551_p13 = pnand %p3550_p2, %p3544_p7 }
  0xa8   : > { %3554 = shalt.err (!%p3551_p13)
}
  0xa9   : > { %s3676_s19 = smov 128   ;;  %s3677_s24 = smov 8  }
  0xaa   : > { %3158 = dma.hbm_to_vmem [thread:$0]  (!%p3943_p11), %s3939_s22, 256, %s3941_s18, %s435_s6, %s3676_s19, %s3676_s19, %s3677_s24  }
  0xab   : > { %s2713_s20 = sshll.u32 %s3932_s17, 8  ;;  %s2844_s25 = sshll.u32 %s3667_s28, 12 }
  0xac   : > { %s3984_s10 = scalar_lea.hbm %s4771_s1, %s2844_s25  ;;  %s459_s21 = scalar_lea.vmem [#allocation7], %s2713_s20 }
  0xad   : > { %s466_s0 = sshll.u32 %s459_s21, 4  ;;  %s4825_s5 = sand.u32 1, %s3667_s28   ;;  %s3986_s0 = int_to_ptr.vmem [resolvable:$true] %s466_s0 }
  0xae   : > { %s3990_s7 = scalar_lea.sflag [#allocation8], %s4825_s5  ;;  %s3555_s9 = scalar_lea.hbm %s3984_s10, 4096 }
  0xaf   : > { %p3556_p0 = scmp.ne.s32.totalorder %s3984_s10, %s3555_s9  ;;  %s3560_s18 = scalar_lea.hbm %s4771_s1, 8192 }
  0xb0   : > { %p3561_p6 = scmp.lt.u32.totalorder %s3984_s10, %s4771_s1  ;;  %p3562_p3 = scmp.lt.u32.totalorder %s3560_s18, %s3555_s9 }
  0xb1   : > { %p3558_p4 = pnand %p3556_p0, %p3527_p9  ;;  %p3564_p7 = scmp.lt.u32.totalorder %s3555_s9, %s3984_s10 }
  0xb2   : > { %p3563_p5 = por %p3562_p3, %p3561_p6 }
  0xb3   : > { %p3559_p8 = pneg %p3558_p4 }
  0xb4   : > { %p3565_p12 = por %p3564_p7, %p3563_p5 }
  0xb6   : > { %p3566_p1 = pnand %p3565_p12, %p3559_p8 }
  0xb8   : > { %3569 = shalt.err (!%p3566_p1)
}
  0xb9   : > { %s3570_s5 = scalar_lea.vmem %s3986_s0, 4096  ;;  %s3678_s21 = smov [#allocation7]  }
  0xba   : > { %p3571_p2 = scmp.ne.s32.totalorder %s3986_s0, %s3570_s5  ;;  %s3575_s20 = sshll.u32 %s3678_s21, 4  ;;  %s3576_s20 = int_to_ptr.vmem [resolvable:$false] %s3575_s20 }
  0xbb   : > { %s3577_s8 = scalar_lea.vmem %s3576_s20, 8192  ;;  %p3578_p4 = scmp.lt.s32.totalorder %s3986_s0, %s3576_s20 }
  0xbc   : > { %p3573_p13 = pnand %p3571_p2, %p3527_p9  ;;  %p3579_p6 = scmp.lt.s32.totalorder %s3577_s8, %s3570_s5 }
  0xbe   : > { %p3574_p0 = pneg %p3573_p13  ;;  %p3580_p3 = por %p3579_p6, %p3578_p4 }
  0xc0   : > { %p3581_p5 = pnand %p3580_p3, %p3574_p0 }
  0xc2   : > { %3584 = shalt.err (!%p3581_p5)
}
  0xc3   : > { %3161 = dma.hbm_to_vmem [thread:$0]  (!%p3943_p11), %s3984_s10, 4096, %s3986_s0, %s3990_s7, %s3676_s19, %s3676_s19, %s3677_s24  }
  0xc4   : > { %p4826_p9 = scmp.ne.s32.totalorder %s4815_s16, 0 }
  0xc6   : > { %478 = sbr.rel (%p4826_p9) target bundleno = 1394 (0x572), region = 72 }
  0xcd   : > { %s4022_s9 = sand.u32 1, %s3659_s26   ;;  %p4827_p8 = scmp.ne.s32.totalorder %s4812_s14, 0 }
  0xce   : > { %s2717_s15 = sshll.u32 %s4022_s9, 4  ;;  %s481_s17 = scalar_lea.sflag [#allocation5], %s4022_s9 }
  0xcf   : > { %s4026_s22 = scalar_lea.vmem [#allocation4], %s2717_s15 }
  0xd0   : > { %3630 = dma.done.wait (%p4827_p8), %s481_s17, 256  }
  0xd1   : > { %3632 = vsyncadd (%p4827_p8), %s481_s17, 4294967040  ;;  %s489_s0 = sand.u32 1, %s3773_s29   ;;  %s2718_s7 = sshll.u32 %s4022_s9, 8 }
  0xd2   : > { %s490_s16 = scalar_lea.sflag [#allocation8], %s489_s0  ;;  %s4034_s23 = scalar_lea.vmem [#allocation7], %s2718_s7 }
  0xd3   : > { %3634 = dma.done.wait (%p4827_p8), %s490_s16, 4096  }
  0xd4   : > { %3636 = vsyncadd (%p4827_p8), %s490_s16, 4294963200  ;;  %p4828_p11 = scmp.eq.s32.totalorder %s3773_s29, 0 }
  0xd6   : > { %3638 = dma.done.wait (%p4828_p11), [#allocation8], 1024   ;;  %p4829_p7 = pmov %p4828_p11 }
  0xd8   : > { %3640 = vsyncadd (%p4829_p7), [#allocation8], 4294966272  ;;  %p4830_p12 = pmov %p4829_p7 }
  0xd9   : > { %p4831_p1 = pmov %p4829_p7 }
  0xda   : > { %3642 = dma.done.wait (%p4830_p12), [#allocation11], 2048  }
  0xdb   : > { %3644 = vsyncadd (%p4831_p1), [#allocation11], 4294965248  ;;  %p4832_p2 = pmov %p4831_p1 }
  0xdc   : > { %p4833_p13 = pmov %p4831_p1 }
  0xdd   : > { %3646 = dma.done.wait (%p4832_p2), [#allocation14], 1024  }
  0xde   : > { %3648 = vsyncadd (%p4833_p13), [#allocation14], 4294966272  ;;  %v3218_v0 = vld [vmem:[%s4773_s3 + $0x40] sm:$0xff]   ;;  %v3220_v2 = vld [vmem:[%s4773_s3 + $0x48] sm:$0xff]   ;;  %vm858_vm0 = vcmask 130048   ;;  %v4790_v45 = vmov 0.0  }
  0xdf   : > { %v3219_v1 = vld [vmem:[%s4773_s3] sm:$0xff]   ;;  %2845 = vmatprep.subr.bf16.mxu0 %v3218_v0  ;;  %v3221_v3 = vld [vmem:[%s4773_s3 + $0x8] sm:$0xff]   ;;  %v3222_v4 = vld [vmem:[%s4773_s3 + $0x50] sm:$0xff]   ;;  %vm3680_vm1 = vmmov 0   ;;  %s4845_s24 = sld [smem:[#allocation40_spill]]  ;;  %s4846_s18 = sld [smem:[#allocation36_spill]] }
  0xe0   : > { %2846 = vmatpush3.bf16.msra.mxu0 %v3219_v1  ;;  %v3223_v5 = vld [vmem:[%s4773_s3 + $0x10] sm:$0xff]   ;;  %v3224_v6 = vld [vmem:[%s4773_s3 + $0x58] sm:$0xff]   ;;  %v3226_v8 = vld [vmem:[%s4773_s3 + $0x60] sm:$0xff]   ;;  %s4847_s5 = sld [smem:[#allocation41_spill]]  ;;  %s4848_s8 = sld [smem:[#allocation38_spill]] }
  0xe1   : > { %2847 = vmatprep.subr.bf16.mxu0 %v3220_v2  ;;  %v3225_v7 = vld [vmem:[%s4773_s3 + $0x18] sm:$0xff]   ;;  %v3227_v9 = vld [vmem:[%s4773_s3 + $0x20] sm:$0xff]   ;;  %v3228_v10 = vld [vmem:[%s4773_s3 + $0x68] sm:$0xff]   ;;  %s555_s15 = scalar_lea.vmem [#allocation15], %s4022_s9  ;;  %s4859_s16 = sld [smem:[#allocation42_spill]] }
  0xe2   : > { %v3229_v11 = vld [vmem:[%s4773_s3 + $0x28] sm:$0xff]   ;;  %v3230_v13 = vld [vmem:[%s4773_s3 + $0x70] sm:$0xff]   ;;  %v3232_v15 = vld [vmem:[%s4773_s3 + $0x78] sm:$0xff]   ;;  %s2576_s17 = sshll.u32 %s555_s15, 4  ;;  %s2564_s19 = scalar_lea.sflag [#allocation6], %s4022_s9  ;;  %s4728_s17 = int_to_ptr.vmem [resolvable:$true] %s2576_s17 }
  0xe3   : > { %v3236_v12 = vld [vmem:[%s4026_s22 + $0x4] ss:$8 sps:$4 sm:$0xff]   ;;  %v3234_v17 = vld [vmem:[%s4026_s22] ss:$8 sps:$4 sm:$0xff]  }
  0xe4   : > { %2848 = vmatpush3.bf16.msra.mxu0 %v3221_v3  ;;  %736 = vmatprep.mubr.bf16.mxu0 %v3236_v12  ;;  %v3231_v14 = vld [vmem:[%s4773_s3 + $0x30] sm:$0xff]   ;;  %v3233_v16 = vld [vmem:[%s4773_s3 + $0x38] sm:$0xff]   ;;  %v3237_v18 = vld [vmem:[%s4772_s2] sm:$0xff]  }
  0xe5   : > { %2849 = vmatprep.subr.bf16.mxu0 %v3222_v4  ;;  %2952 = vmatprep.mubr.msk.bf16.mxu1 %vm858_vm0, %v3237_v18  ;;  %v2723_v23 = vld [vmem:[%s4774_s4] ss:$0 sm:$0xff]  ;;  %v3238_v29 = vld [vmem:[%s4772_s2 + $0x8] sm:$0xff]   ;;  %v3239_v30 = vld [vmem:[%s4772_s2 + $0x10] sm:$0xff]  }
  0xe6   : > { %v3240_v31 = vld [vmem:[%s4772_s2 + $0x18] sm:$0xff]   ;;  %v3241_v32 = vld [vmem:[%s4772_s2 + $0x20] sm:$0xff]   ;;  %v3242_v33 = vld [vmem:[%s4772_s2 + $0x28] sm:$0xff]  }
  0xe7   : > { %v3243_v34 = vld [vmem:[%s4772_s2 + $0x30] sm:$0xff]   ;;  %v3244_v35 = vld [vmem:[%s4772_s2 + $0x38] sm:$0xff]   ;;  %v3245_v36 = vld [vmem:[%s4772_s2 + $0x40] sm:$0xff]  }
  0xe8   : > { %2850 = vmatpush3.bf16.msra.mxu0 %v3223_v5  ;;  %v3246_v37 = vld [vmem:[%s4772_s2 + $0x48] sm:$0xff]   ;;  %v3247_v38 = vld [vmem:[%s4772_s2 + $0x50] sm:$0xff]   ;;  %v3248_v39 = vld [vmem:[%s4772_s2 + $0x58] sm:$0xff]  }
  0xe9   : > { %2851 = vmatprep.subr.bf16.mxu0 %v3224_v6  ;;  %v3249_v40 = vld [vmem:[%s4772_s2 + $0x60] sm:$0xff]   ;;  %v3250_v41 = vld [vmem:[%s4772_s2 + $0x68] sm:$0xff]   ;;  %v3251_v42 = vld [vmem:[%s4772_s2 + $0x70] sm:$0xff]  }
  0xea   : > { %v3252_v43 = vld [vmem:[%s4772_s2 + $0x78] sm:$0xff]   ;;  %v3253_v44 = vld [vmem:[#allocation12] sm:$0xff]   ;;  %v3254_v46 = vld [vmem:[#allocation12 + $0x8] sm:$0xff]  }
  0xeb   : > { %v3255_v47 = vld [vmem:[#allocation12 + $0x10] sm:$0xff]   ;;  %v3256_v48 = vld [vmem:[#allocation12 + $0x18] sm:$0xff]   ;;  %v3257_v49 = vld [vmem:[#allocation12 + $0x20] sm:$0xff]  }
  0xec   : > { %2852 = vmatpush3.bf16.msra.mxu0 %v3225_v7  ;;  %v3258_v50 = vld [vmem:[#allocation12 + $0x28] sm:$0xff]   ;;  %v3259_v51 = vld [vmem:[#allocation12 + $0x30] sm:$0xff]   ;;  %v3260_v52 = vld [vmem:[#allocation12 + $0x38] sm:$0xff]  }
  0xed   : > { %2853 = vmatprep.subr.bf16.mxu0 %v3226_v8  ;;  %v4180_v53 = vld [vmem:[#allocation9] sm:$0xff]   ;;  %v1134_v55 = vld [vmem:[%s4034_s23 + $0x10] sm:$0xff]  ;;  %v1135_v56 = vld [vmem:[%s4034_s23 + $0x18] sm:$0xff] }
  0xee   : > { %v1132_v58 = vld [vmem:[%s4034_s23] sm:$0xff]  ;;  %v1133_v59 = vld [vmem:[%s4034_s23 + $0x8] sm:$0xff]  ;;  %v1138_v7 = vld [vmem:[%s4034_s23 + $0x30] sm:$0xff] }
  0xef   : > { %v1139_v8 = vld [vmem:[%s4034_s23 + $0x38] sm:$0xff] }
  0xf0   : > { %2854 = vmatpush3.bf16.msra.mxu0 %v3227_v9 }
  0xf1   : > { %2855 = vmatprep.subr.bf16.mxu0 %v3228_v10  ;;  %v1136_v10 = vld [vmem:[%s4034_s23 + $0x20] sm:$0xff] }
  0xf4   : > { %2856 = vmatpush3.bf16.msra.mxu0 %v3229_v11  ;;  %v1137_v11 = vld [vmem:[%s4034_s23 + $0x28] sm:$0xff] }
  0xf5   : > { %2857 = vmatprep.subr.bf16.mxu0 %v3230_v13 }
  0xf8   : > { %2858 = vmatpush3.bf16.msra.mxu0 %v3231_v14 }
  0xf9   : > { %2859 = vmatprep.subr.bf16.mxu0 %v3232_v15 }
  0xfc   : > { %2860 = vmatpush3.bf16.msra.mxu0 %v3233_v16 }
  0xfd   : > { %2984 = vmatprep.subr.bf16.mxu0 %v4790_v45 }
  0xff   : > { %737 = vmatmul.mubr.bf16.vlgmr.msra.gmra.mrb[0].mxu0 %v3234_v17 }
 0x100   : > { %2985 = vmatpush3.bf16.msra.mxu0 %v3253_v44  ;;  %3000 = vmatprep.mubr.msk.bf16.mxu0 %vm3680_vm1, %v4790_v45 }
 0x101   : > { %2986 = vmatprep.subr.bf16.mxu0 %v4790_v45 }
 0x104   : > { %2987 = vmatpush3.bf16.msra.mxu0 %v3254_v46 }
 0x105   : > { %2988 = vmatprep.subr.bf16.mxu0 %v4790_v45 }
 0x108   : > { %2989 = vmatpush3.bf16.msra.mxu0 %v3255_v47 }
 0x109   : > { %2990 = vmatprep.subr.bf16.mxu0 %v4790_v45 }
 0x10c   : > { %2991 = vmatpush3.bf16.msra.mxu0 %v3256_v48 }
 0x10d   : > { %2992 = vmatprep.subr.bf16.mxu0 %v4790_v45 }
 0x110   : > { %2993 = vmatpush3.bf16.msra.mxu0 %v3257_v49 }
 0x111   : > { %2994 = vmatprep.subr.bf16.mxu0 %v4790_v45 }
 0x114   : > { %2995 = vmatpush3.bf16.msra.mxu0 %v3258_v50  ;;  %v1146_v50 = vld [vmem:[%s4034_s23 + $0x70] sm:$0xff] }
 0x115   : > { %2996 = vmatprep.subr.bf16.mxu0 %v4790_v45 }
 0x118   : > { %2997 = vmatpush3.bf16.msra.mxu0 %v3259_v51  ;;  %v1147_v51 = vld [vmem:[%s4034_s23 + $0x78] sm:$0xff] }
 0x119   : > { %2998 = vmatprep.subr.bf16.mxu0 %v4790_v45 }
 0x11c   : > { %2999 = vmatpush3.bf16.msra.mxu0 %v3260_v52 }
 0x11d   : > { %3024 = vmatprep.subr.bf16.mxu0 %v4180_v53 }
 0x1d2   : > { %v2861_v19 = vpop.f32.mrb[0].mxu0 }
 0x1d3   : > { %v2862_v20 = vpop.f32.mrb[1].mxu0 }
 0x1d4   : > { %v2863_v21 = vadd.f32 %v2862_v20, %v2861_v19  ;;  %v2864_v22 = vpop.f32.mrb[2].mxu0 }
 0x1d5   : > { %v2865_v24 = vpop.f32.mrb[3].mxu0 }
 0x1d6   : > { %v2866_v25 = vadd.f32 %v2865_v24, %v2864_v22  ;;  %v739_v26 = vadd.f32 %v2863_v21, %v2723_v23 }
 0x1d8   : > { %v742_v27 = vadd.f32 %v2866_v25, %v2723_v23 }
 0x1da   : > { %v777_v28 = vpack.c.bf16 %v742_v27, %v739_v26  ;;  %v1142_v27 = vld [vmem:[%s4034_s23 + $0x50] sm:$0xff] }
 0x1dc   : > { %2950 = vmatprep.subr.bf16.mxu1 %v777_v28 }
 0x1dd   : > { %2951 = vmatpush3.bf16.msra.mxu1 %v777_v28  ;;  %v1143_v28 = vld [vmem:[%s4034_s23 + $0x58] sm:$0xff] }
 0x1de   : > { %3004 = vmatprep.subr.bf16.mxu1 %v4790_v45 }
 0x1e0   : > { %2953 = vmatmul.mubr.msk.bf16.vlgmr.msra.gmra.mrb[0].mxu1 %vm858_vm0, %v3238_v29 }
 0x1e1   : > { %2956 = vmatprep.mubr.msk.bf16.mxu1 %vm858_vm0, %v3239_v30  ;;  %v1140_v30 = vld [vmem:[%s4034_s23 + $0x40] sm:$0xff] }
 0x1e8   : > { %2957 = vmatmul.mubr.msk.bf16.gmra.mrb[4].mxu1 %vm858_vm0, %v3240_v31  ;;  %v1141_v31 = vld [vmem:[%s4034_s23 + $0x48] sm:$0xff] }
 0x1e9   : > { %2960 = vmatprep.mubr.msk.bf16.mxu1 %vm858_vm0, %v3241_v32 }
 0x1f0   : > { %2961 = vmatmul.mubr.msk.bf16.gmra.mrb[8].mxu1 %vm858_vm0, %v3242_v33 }
 0x1f1   : > { %2964 = vmatprep.mubr.msk.bf16.mxu1 %vm858_vm0, %v3243_v34 }
 0x1f8   : > { %2965 = vmatmul.mubr.msk.bf16.gmra.mrb[12].mxu1 %vm858_vm0, %v3244_v35 }
 0x1f9   : > { %2968 = vmatprep.mubr.msk.bf16.mxu1 %vm858_vm0, %v3245_v36 }
 0x200   : > { %2969 = vmatmul.mubr.msk.bf16.gmra.mrb[16].mxu1 %vm858_vm0, %v3246_v37 }
 0x201   : > { %2972 = vmatprep.mubr.msk.bf16.mxu1 %vm858_vm0, %v3247_v38 }
 0x208   : > { %2973 = vmatmul.mubr.msk.bf16.gmra.mrb[20].mxu1 %vm858_vm0, %v3248_v39 }
 0x209   : > { %2976 = vmatprep.mubr.msk.bf16.mxu1 %vm858_vm0, %v3249_v40 }
 0x210   : > { %2977 = vmatmul.mubr.msk.bf16.gmra.mrb[24].mxu1 %vm858_vm0, %v3250_v41 }
 0x211   : > { %2980 = vmatprep.mubr.msk.bf16.mxu1 %vm858_vm0, %v3251_v42 }
 0x218   : > { %2981 = vmatmul.mubr.msk.bf16.gmra.mrb[28].mxu1 %vm858_vm0, %v3252_v43 }
 0x219   : > { %3020 = vmatprep.mubr.msk.bf16.mxu1 %vm3680_vm1, %v4790_v45 }
 0x2b3   : > { %v4183_v54 = vpop.f32.mrb[0].mxu1 }
 0x2b4   : > { %v4187_v57 = vpop.f32.mrb[1].mxu1  ;;  %v1166_v61 = vadd.f32 %v4183_v54, %v1134_v55  ;;  %v1144_v55 = vld [vmem:[%s4034_s23 + $0x60] sm:$0xff] }
 0x2b5   : > { %v4191_v60 = vpop.f32.mrb[2].mxu1  ;;  %v1164_v0 = vadd.f32 %v1132_v58, %v4187_v57 }
 0x2b6   : > { %v1167_v62 = vadd.f32 %v4191_v60, %v1135_v56  ;;  %v4195_v63 = vpop.f32.mrb[3].mxu1  ;;  %v1145_v56 = vld [vmem:[%s4034_s23 + $0x68] sm:$0xff] }
 0x2b7   : > { %v1165_v1 = vadd.f32 %v1133_v59, %v4195_v63 }
 0x2b8   : > { %v4199_v2 = vpack.c.bf16 %v1167_v62, %v1166_v61 }
 0x2b9   : > { %v4201_v3 = vpack.c.bf16 %v1165_v1, %v1164_v0 }
 0x2ba   : > { %v1246_v12 = vunpack.c.l.bf16 %v4199_v2  ;;  %v1247_v22 = vunpack.c.h.bf16 %v4199_v2 }
 0x2bb   : > { %v1244_v4 = vunpack.c.l.bf16 %v4201_v3  ;;  %v1245_v5 = vunpack.c.h.bf16 %v4201_v3  ;;  %v4205_v6 = vpop.f32.mrb[4].mxu1 }
 0x2bc   : > { %v4209_v9 = vpop.f32.mrb[5].mxu1  ;;  %v1170_v15 = vadd.f32 %v4205_v6, %v1138_v7 }
 0x2bd   : > { %v1276_v13 = vadd.f32 %v1245_v5, %v1244_v4  ;;  %v4214_v14 = vpop.f32.mrb[6].mxu1  ;;  %v1168_v19 = vadd.f32 %v1136_v10, %v4209_v9 }
 0x2be   : > { %v1171_v16 = vadd.f32 %v4214_v14, %v1139_v8  ;;  %v4218_v17 = vpop.f32.mrb[7].mxu1 }
 0x2bf   : > { %v1277_v18 = vadd.f32 %v1276_v13, %v1246_v12  ;;  %v1169_v20 = vadd.f32 %v1137_v11, %v4218_v17 }
 0x2c0   : > { %v4222_v21 = vpack.c.bf16 %v1171_v16, %v1170_v15 }
 0x2c1   : > { %v4225_v23 = vpack.c.bf16 %v1169_v20, %v1168_v19  ;;  %v1278_v25 = vadd.f32 %v1277_v18, %v1247_v22  ;;  %v1150_v19 = vld [vmem:[%s4034_s23 + $0x90] sm:$0xff]  ;;  %v1151_v20 = vld [vmem:[%s4034_s23 + $0x98] sm:$0xff] }
 0x2c2   : > { %v1250_v38 = vunpack.c.l.bf16 %v4222_v21  ;;  %v1251_v43 = vunpack.c.h.bf16 %v4222_v21 }
 0x2c3   : > { %v1248_v24 = vunpack.c.l.bf16 %v4225_v23  ;;  %v4228_v26 = vpop.f32.mrb[8].mxu1  ;;  %v1249_v32 = vunpack.c.h.bf16 %v4225_v23 }
 0x2c4   : > { %v4232_v29 = vpop.f32.mrb[9].mxu1  ;;  %v1174_v35 = vadd.f32 %v4228_v26, %v1142_v27 }
 0x2c5   : > { %v1279_v33 = vadd.f32 %v1278_v25, %v1248_v24  ;;  %v4237_v34 = vpop.f32.mrb[10].mxu1  ;;  %v1172_v40 = vadd.f32 %v1140_v30, %v4232_v29  ;;  %v1148_v24 = vld [vmem:[%s4034_s23 + $0x80] sm:$0xff]  ;;  %v1149_v25 = vld [vmem:[%s4034_s23 + $0x88] sm:$0xff] }
 0x2c6   : > { %v1175_v36 = vadd.f32 %v4237_v34, %v1143_v28  ;;  %v4241_v37 = vpop.f32.mrb[11].mxu1 }
 0x2c7   : > { %v1280_v39 = vadd.f32 %v1279_v33, %v1249_v32  ;;  %v1173_v41 = vadd.f32 %v1141_v31, %v4241_v37 }
 0x2c8   : > { %v4246_v42 = vpack.c.bf16 %v1175_v36, %v1174_v35 }
 0x2c9   : > { %v1281_v44 = vadd.f32 %v1280_v39, %v1250_v38  ;;  %v4249_v46 = vpack.c.bf16 %v1173_v41, %v1172_v40 }
 0x2ca   : > { %v1254_v4 = vunpack.c.l.bf16 %v4246_v42  ;;  %v1255_v11 = vunpack.c.h.bf16 %v4246_v42 }
 0x2cb   : > { %v1252_v47 = vunpack.c.l.bf16 %v4249_v46  ;;  %v1282_v48 = vadd.f32 %v1281_v44, %v1251_v43  ;;  %v4252_v49 = vpop.f32.mrb[12].mxu1  ;;  %v1253_v58 = vunpack.c.h.bf16 %v4249_v46 }
 0x2cc   : > { %v4256_v52 = vpop.f32.mrb[13].mxu1  ;;  %v1178_v62 = vadd.f32 %v4252_v49, %v1146_v50 }
 0x2cd   : > { %v1283_v59 = vadd.f32 %v1282_v48, %v1252_v47  ;;  %v4261_v61 = vpop.f32.mrb[14].mxu1  ;;  %v1176_v7 = vadd.f32 %v1144_v55, %v4256_v52  ;;  %v1155_v55 = vld [vmem:[%s4034_s23 + $0xb8] sm:$0xff] }
 0x2ce   : > { %v1179_v0 = vadd.f32 %v4261_v61, %v1147_v51  ;;  %v4265_v1 = vpop.f32.mrb[15].mxu1  ;;  %v1154_v51 = vld [vmem:[%s4034_s23 + $0xb0] sm:$0xff] }
 0x2cf   : > { %v1284_v5 = vadd.f32 %v1283_v59, %v1253_v58  ;;  %v1177_v8 = vadd.f32 %v1145_v56, %v4265_v1  ;;  %v1152_v58 = vld [vmem:[%s4034_s23 + $0xa0] sm:$0xff]  ;;  %v1153_v59 = vld [vmem:[%s4034_s23 + $0xa8] sm:$0xff] }
 0x2d0   : > { %v4270_v10 = vpack.c.bf16 %v1179_v0, %v1178_v62 }
 0x2d1   : > { %v1285_v12 = vadd.f32 %v1284_v5, %v1254_v4  ;;  %v4273_v13 = vpack.c.bf16 %v1177_v8, %v1176_v7 }
 0x2d2   : > { %v1258_v35 = vunpack.c.l.bf16 %v4270_v10  ;;  %v1259_v41 = vunpack.c.h.bf16 %v4270_v10 }
 0x2d3   : > { %v1256_v15 = vunpack.c.l.bf16 %v4273_v13  ;;  %v1286_v16 = vadd.f32 %v1285_v12, %v1255_v11  ;;  %v4276_v18 = vpop.f32.mrb[16].mxu1  ;;  %v1257_v27 = vunpack.c.h.bf16 %v4273_v13 }
 0x2d4   : > { %v4280_v22 = vpop.f32.mrb[17].mxu1  ;;  %v1182_v31 = vadd.f32 %v4276_v18, %v1150_v19 }
 0x2d5   : > { %v1287_v28 = vadd.f32 %v1286_v16, %v1256_v15  ;;  %v4285_v30 = vpop.f32.mrb[18].mxu1  ;;  %v1180_v38 = vadd.f32 %v1148_v24, %v4280_v22 }
 0x2d6   : > { %v1183_v32 = vadd.f32 %v4285_v30, %v1151_v20  ;;  %v4289_v33 = vpop.f32.mrb[19].mxu1 }
 0x2d7   : > { %v1288_v36 = vadd.f32 %v1287_v28, %v1257_v27  ;;  %v1181_v39 = vadd.f32 %v1149_v25, %v4289_v33 }
 0x2d8   : > { %v4294_v40 = vpack.c.bf16 %v1183_v32, %v1182_v31  ;;  %v1158_v32 = vld [vmem:[%s4034_s23 + $0xd0] sm:$0xff] }
 0x2d9   : > { %v1289_v43 = vadd.f32 %v1288_v36, %v1258_v35  ;;  %v4297_v44 = vpack.c.bf16 %v1181_v39, %v1180_v38  ;;  %v1159_v35 = vld [vmem:[%s4034_s23 + $0xd8] sm:$0xff]  ;;  %v1156_v38 = vld [vmem:[%s4034_s23 + $0xc0] sm:$0xff]  ;;  %v1157_v39 = vld [vmem:[%s4034_s23 + $0xc8] sm:$0xff] }
 0x2da   : > { %v1262_v11 = vunpack.c.l.bf16 %v4294_v40  ;;  %v1263_v20 = vunpack.c.h.bf16 %v4294_v40 }
 0x2db   : > { %v1260_v47 = vunpack.c.l.bf16 %v4297_v44  ;;  %v1290_v48 = vadd.f32 %v1289_v43, %v1259_v41  ;;  %v4300_v50 = vpop.f32.mrb[20].mxu1  ;;  %v1261_v62 = vunpack.c.h.bf16 %v4297_v44 }
 0x2dc   : > { %v4304_v56 = vpop.f32.mrb[21].mxu1  ;;  %v1186_v5 = vadd.f32 %v4300_v50, %v1154_v51 }
 0x2dd   : > { %v1291_v0 = vadd.f32 %v1290_v48, %v1260_v47  ;;  %v4309_v4 = vpop.f32.mrb[22].mxu1  ;;  %v1184_v15 = vadd.f32 %v1152_v58, %v4304_v56  ;;  %v3269_v48 = vld [vmem:[#allocation13] sm:$0xff]  }
 0x2de   : > { %4834 = vst [vmem:[#allocation24_spill] sm:$0xff] %v4309_v4  ;;  %v1187_v7 = vadd.f32 %v4309_v4, %v1155_v55  ;;  %v4313_v8 = vpop.f32.mrb[23].mxu1  ;;  %3005 = vmatpush3.bf16.msra.mxu1 %v3269_v48 }
 0x2df   : > { %4835 = vst [vmem:[#allocation25_spill] sm:$0xff] %v4313_v8  ;;  %v1292_v12 = vadd.f32 %v1291_v0, %v1261_v62  ;;  %v1185_v16 = vadd.f32 %v1153_v59, %v4313_v8  ;;  %3006 = vmatprep.subr.bf16.mxu1 %v4790_v45 }
 0x2e0   : > { %v4318_v19 = vpack.c.bf16 %v1187_v7, %v1186_v5  ;;  %v3270_v7 = vld [vmem:[#allocation13 + $0x8] sm:$0xff]  }
 0x2e1   : > { %v1293_v24 = vadd.f32 %v1292_v12, %v1262_v11  ;;  %v4321_v25 = vpack.c.bf16 %v1185_v16, %v1184_v15 }
 0x2e2   : > { %v1266_v59 = vunpack.c.l.bf16 %v4318_v19  ;;  %v1267_v12 = vunpack.c.h.bf16 %v4318_v19  ;;  %3007 = vmatpush3.bf16.msra.mxu1 %v3270_v7 }
 0x2e3   : > { %v1264_v27 = vunpack.c.l.bf16 %v4321_v25  ;;  %v1294_v28 = vadd.f32 %v1293_v24, %v1263_v20  ;;  %v4324_v31 = vpop.f32.mrb[24].mxu1  ;;  %v1265_v41 = vunpack.c.h.bf16 %v4321_v25  ;;  %3008 = vmatprep.subr.bf16.mxu1 %v4790_v45 }
 0x2e4   : > { %4836 = vst [vmem:[#allocation26_spill] sm:$0xff] %v4324_v31  ;;  %v4328_v36 = vpop.f32.mrb[25].mxu1  ;;  %v1190_v51 = vadd.f32 %v4324_v31, %v1158_v32  ;;  %v1163_v32 = vld [vmem:[%s4034_s23 + $0xf8] sm:$0xff] }
 0x2e5   : > { %4837 = vst [vmem:[#allocation27_spill] sm:$0xff] %v4328_v36  ;;  %v1295_v43 = vadd.f32 %v1294_v28, %v1264_v27  ;;  %v4333_v47 = vpop.f32.mrb[26].mxu1  ;;  %v1188_v0 = vadd.f32 %v1156_v38, %v4328_v36  ;;  %v1162_v28 = vld [vmem:[%s4034_s23 + $0xf0] sm:$0xff] }
 0x2e6   : > { %4838 = vst [vmem:[#allocation28_spill] sm:$0xff] %v4333_v47  ;;  %v1191_v55 = vadd.f32 %v4333_v47, %v1159_v35  ;;  %v4337_v58 = vpop.f32.mrb[27].mxu1  ;;  %v3271_v35 = vld [vmem:[#allocation13 + $0x10] sm:$0xff]  }
 0x2e7   : > { %4839 = vst [vmem:[#allocation29_spill] sm:$0xff] %v4337_v58  ;;  %v1296_v62 = vadd.f32 %v1295_v43, %v1265_v41  ;;  %v1189_v5 = vadd.f32 %v1157_v39, %v4337_v58  ;;  %v1160_v39 = vld [vmem:[%s4034_s23 + $0xe0] sm:$0xff]  ;;  %v1161_v41 = vld [vmem:[%s4034_s23 + $0xe8] sm:$0xff]  ;;  %3009 = vmatpush3.bf16.msra.mxu1 %v3271_v35 }
 0x2e8   : > { %v4342_v11 = vpack.c.bf16 %v1191_v55, %v1190_v51 }
 0x2e9   : > { %v1297_v15 = vadd.f32 %v1296_v62, %v1266_v59  ;;  %v4346_v16 = vpack.c.bf16 %v1189_v5, %v1188_v0 }
 0x2ea   : > { %v1270_v0 = vunpack.c.l.bf16 %v4342_v11 }
 0x2eb   : > { %v1268_v20 = vunpack.c.l.bf16 %v4346_v16  ;;  %v1298_v24 = vadd.f32 %v1297_v15, %v1267_v12  ;;  %v4349_v27 = vpop.f32.mrb[28].mxu1  ;;  %v1269_v43 = vunpack.c.h.bf16 %v4346_v16  ;;  %v3272_v15 = vld [vmem:[#allocation13 + $0x18] sm:$0xff]  }
 0x2ec   : > { %4840 = vst [vmem:[#allocation30_spill] sm:$0xff] %v4349_v27  ;;  %v4353_v38 = vpop.f32.mrb[29].mxu1  ;;  %v1194_v55 = vadd.f32 %v4349_v27, %v1162_v28 }
 0x2ed   : > { %4841 = vst [vmem:[#allocation31_spill] sm:$0xff] %v4353_v38  ;;  %v1299_v48 = vadd.f32 %v1298_v24, %v1268_v20  ;;  %v4359_v51 = vpop.f32.mrb[30].mxu1  ;;  %v1192_v7 = vadd.f32 %v1160_v39, %v4353_v38  ;;  %v4844_v20 = vmov 0.0   ;;  %v1271_v24 = vunpack.c.h.bf16 %v4342_v11 }
 0x2ee   : > { %4842 = vst [vmem:[#allocation32_spill] sm:$0xff] %v4359_v51  ;;  %v1195_v59 = vadd.f32 %v4359_v51, %v1163_v32  ;;  %v4363_v62 = vpop.f32.mrb[31].mxu1  ;;  %3010 = vmatprep.subr.bf16.mxu1 %v4844_v20 }
 0x2ef   : > { %4843 = vst [vmem:[#allocation33_spill] sm:$0xff] %v4363_v62  ;;  %v1300_v5 = vadd.f32 %v1299_v48, %v1269_v43  ;;  %v1193_v12 = vadd.f32 %v1161_v41, %v4363_v62  ;;  %3011 = vmatpush3.bf16.msra.mxu1 %v3272_v15  ;;  %v3273_v43 = vld [vmem:[#allocation13 + $0x20] sm:$0xff]  }
 0x2f0   : > { %v4368_v45 = vpack.c.bf16 %v1195_v59, %v1194_v55  ;;  %3012 = vmatprep.subr.bf16.mxu1 %v4844_v20  ;;  %v3274_v55 = vld [vmem:[#allocation13 + $0x28] sm:$0xff]  }
 0x2f1   : > { %v1301_v28 = vadd.f32 %v1300_v5, %v1270_v0  ;;  %v4372_v27 = vpack.c.bf16 %v1193_v12, %v1192_v7  ;;  %v3275_v7 = vld [vmem:[#allocation13 + $0x30] sm:$0xff]  }
 0x2f2   : > { %v1274_v41 = vunpack.c.l.bf16 %v4368_v45  ;;  %v1275_v59 = vunpack.c.h.bf16 %v4368_v45 }
 0x2f3   : > { %v1272_v32 = vunpack.c.l.bf16 %v4372_v27  ;;  %v1302_v51 = vadd.f32 %v1301_v28, %v1271_v24  ;;  %v1273_v39 = vunpack.c.h.bf16 %v4372_v27  ;;  %3013 = vmatpush3.bf16.msra.mxu1 %v3273_v43 }
 0x2f4   : > { %3014 = vmatprep.subr.bf16.mxu1 %v4844_v20 }
 0x2f5   : > { %v1303_v35 = vadd.f32 %v1302_v51, %v1272_v32 }
 0x2f7   : > { %v1304_v48 = vadd.f32 %v1303_v35, %v1273_v39  ;;  %3015 = vmatpush3.bf16.msra.mxu1 %v3274_v55  ;;  %v3262_v35 = vld [vmem:[#allocation9 + $0x8] sm:$0xff]  }
 0x2f8   : > { %3016 = vmatprep.subr.bf16.mxu1 %v4844_v20  ;;  %v3266_v55 = vld [vmem:[#allocation9 + $0x28] sm:$0xff]  }
 0x2f9   : > { %v1305_v0 = vadd.f32 %v1304_v48, %v1274_v41  ;;  %v3263_v41 = vld [vmem:[#allocation9 + $0x10] sm:$0xff]   ;;  %v3264_v48 = vld [vmem:[#allocation9 + $0x18] sm:$0xff]  }
 0x2fb   : > { %v1306_v5 = vadd.f32 %v1305_v0, %v1275_v59  ;;  %3017 = vmatpush3.bf16.msra.mxu1 %v3275_v7  ;;  %v3267_v59 = vld [vmem:[#allocation9 + $0x30] sm:$0xff]   ;;  %v3268_v0 = vld [vmem:[#allocation9 + $0x38] sm:$0xff]  }
 0x2fc   : > { %3018 = vmatprep.subr.bf16.mxu1 %v4844_v20  ;;  %v3265_v20 = vld [vmem:[#allocation9 + $0x20] sm:$0xff]  }
 0x2fd   : > { %v1307_v12 = vrot.slane %v1306_v5, 4 }
 0x2ff   : > { %v1308_v15 = vadd.f32 %v1307_v12, %v1306_v5  ;;  %v4405_v5 = vld [vmem:[%s4846_s18] ss:$0 sm:$0xff] }
 0x301   : > { %v1309_v51 = vrot.slane %v1308_v15, 2 }
 0x303   : > { %v1310_v24 = vadd.f32 %v1309_v51, %v1308_v15 }
 0x305   : > { %v1311_v28 = vrot.slane %v1310_v24, 1 }
 0x307   : > { %v1312_v32 = vadd.f32 %v1311_v28, %v1310_v24 }
 0x309   : > { %v1314_v43 = vmul.f32 0.00390625, %v1312_v32 }
 0x30b   : > { %v1315_v39 = vpack.c.bf16 %v1314_v43, %v1314_v43 }
 0x30d   : > { %3001 = vmatmul.mubr.bf16.vlgmr.msra.gmra.mrb[4].mxu0 %v1315_v39 }
 0x30e   : > { %3025 = vmatpush3.bf16.msra.mxu0 %v4180_v53  ;;  %3040 = vmatprep.mubr.bf16.mxu0 %v4201_v3  ;;  %v3276_v53 = vld [vmem:[#allocation13 + $0x38] sm:$0xff]   ;;  %v1332_v3 = vld [vmem:[%s4845_s24] sm:$0x1]  ;;  %s3585_s24 = scalar_lea.vmem %s4728_s17, 16 }
 0x30f   : > { %3026 = vmatprep.subr.bf16.mxu0 %v3262_v35  ;;  %3019 = vmatpush3.bf16.msra.mxu1 %v3276_v53  ;;  %p3586_p0 = scmp.ne.s32.totalorder %s4728_s17, %s3585_s24 }
 0x311   : > { %p3587_p4 = pnand %p3586_p0, %p3923_p10 }
 0x312   : > { %3027 = vmatpush3.bf16.msra.mxu0 %v3262_v35 }
 0x313   : > { %3028 = vmatprep.subr.bf16.mxu0 %v3263_v41  ;;  %p3588_p6 = pneg %p3587_p4 }
 0x316   : > { %3029 = vmatpush3.bf16.msra.mxu0 %v3263_v41 }
 0x317   : > { %3030 = vmatprep.subr.bf16.mxu0 %v3264_v48 }
 0x31a   : > { %3031 = vmatpush3.bf16.msra.mxu0 %v3264_v48 }
 0x31b   : > { %3032 = vmatprep.subr.bf16.mxu0 %v3265_v20 }
 0x31e   : > { %3033 = vmatpush3.bf16.msra.mxu0 %v3265_v20 }
 0x31f   : > { %3034 = vmatprep.subr.bf16.mxu0 %v3266_v55 }
 0x322   : > { %3035 = vmatpush3.bf16.msra.mxu0 %v3266_v55 }
 0x323   : > { %3036 = vmatprep.subr.bf16.mxu0 %v3267_v59 }
 0x326   : > { %3037 = vmatpush3.bf16.msra.mxu0 %v3267_v59 }
 0x327   : > { %3038 = vmatprep.subr.bf16.mxu0 %v3268_v0 }
 0x32a   : > { %3039 = vmatpush3.bf16.msra.mxu0 %v3268_v0 }
 0x32d   : > { %3041 = vmatmul.mubr.bf16.vlgmr.msra.gmra.mrb[8].mxu0 %v4199_v2  ;;  %v3277_v2 = vld [vmem:[#allocation10] sm:$0xff]  }
 0x32e   : > { %3044 = vmatprep.mubr.bf16.mxu0 %v4225_v23  ;;  %3072 = vmatprep.subr.bf16.mxu1 %v3277_v2 }
 0x335   : > { %3045 = vmatmul.mubr.bf16.gmra.mrb[12].mxu0 %v4222_v21 }
 0x336   : > { %3048 = vmatprep.mubr.bf16.mxu0 %v4249_v46 }
 0x33d   : > { %3049 = vmatmul.mubr.bf16.gmra.mrb[16].mxu0 %v4246_v42 }
 0x33e   : > { %3052 = vmatprep.mubr.bf16.mxu0 %v4273_v13 }
 0x345   : > { %3053 = vmatmul.mubr.bf16.gmra.mrb[20].mxu0 %v4270_v10 }
 0x346   : > { %3056 = vmatprep.mubr.bf16.mxu0 %v4297_v44  ;;  %v3278_v44 = vld [vmem:[#allocation10 + $0x8] sm:$0xff]  }
 0x34d   : > { %3057 = vmatmul.mubr.bf16.gmra.mrb[24].mxu0 %v4294_v40 }
 0x34e   : > { %3060 = vmatprep.mubr.bf16.mxu0 %v4321_v25  ;;  %v3281_v25 = vld [vmem:[#allocation10 + $0x20] sm:$0xff]  }
 0x355   : > { %3061 = vmatmul.mubr.bf16.gmra.mrb[28].mxu0 %v4318_v19  ;;  %v3279_v19 = vld [vmem:[#allocation10 + $0x10] sm:$0xff]  }
 0x356   : > { %3064 = vmatprep.mubr.bf16.mxu0 %v4346_v16  ;;  %v3283_v16 = vld [vmem:[#allocation10 + $0x30] sm:$0xff]  }
 0x35d   : > { %3065 = vmatmul.mubr.bf16.gmra.mrb[32].mxu0 %v4342_v11  ;;  %v3282_v11 = vld [vmem:[#allocation10 + $0x28] sm:$0xff]  }
 0x35e   : > { %3068 = vmatprep.mubr.bf16.mxu0 %v4372_v27  ;;  %v3284_v27 = vld [vmem:[#allocation10 + $0x38] sm:$0xff]  }
 0x365   : > { %3069 = vmatmul.mubr.bf16.gmra.mrb[36].mxu0 %v4368_v45  ;;  %v3280_v45 = vld [vmem:[#allocation10 + $0x18] sm:$0xff]  }
 0x3e0   : > { %v1415_v21 = vpop.f32.mrb[4].mxu0 }
 0x3e1   : > { %v1416_v23 = vadd.f32 %v1415_v21, %v1332_v3  ;;  %v3002_v42 = vpop.f32.mrb[5].mxu0 }
 0x3e2   : > { %v1418_v46 = vpop.f32.mrb[6].mxu0 }
 0x3e3   : > { %v1421_v10 = vmax.f32 %v1416_v23, 0.0  ;;  %v3003_v13 = vpop.f32.mrb[7].mxu0 }
 0x3e5   : > { %v1422_v40 = vpack.c.bf16 %v1421_v10, %v1421_v10 }
 0x3e7   : > { %3021 = vmatmul.mubr.bf16.vlgmr.msra.gmra.mrb[32].mxu1 %v1422_v40 }
 0x3e8   : > { %3073 = vmatpush3.bf16.msra.mxu1 %v3277_v2 }
 0x3e9   : > { %3074 = vmatprep.subr.bf16.mxu1 %v3278_v44 }
 0x3ec   : > { %3075 = vmatpush3.bf16.msra.mxu1 %v3278_v44 }
 0x3ed   : > { %3076 = vmatprep.subr.bf16.mxu1 %v3279_v19 }
 0x3f0   : > { %3077 = vmatpush3.bf16.msra.mxu1 %v3279_v19 }
 0x3f1   : > { %3078 = vmatprep.subr.bf16.mxu1 %v3280_v45 }
 0x3f4   : > { %3079 = vmatpush3.bf16.msra.mxu1 %v3280_v45 }
 0x3f5   : > { %3080 = vmatprep.subr.bf16.mxu1 %v3281_v25 }
 0x3f8   : > { %3081 = vmatpush3.bf16.msra.mxu1 %v3281_v25 }
 0x3f9   : > { %3082 = vmatprep.subr.bf16.mxu1 %v3282_v11 }
 0x3fc   : > { %3083 = vmatpush3.bf16.msra.mxu1 %v3282_v11 }
 0x3fd   : > { %3084 = vmatprep.subr.bf16.mxu1 %v3283_v16 }
 0x400   : > { %v3042_v7 = vpop.f32.mrb[8].mxu0  ;;  %3085 = vmatpush3.bf16.msra.mxu1 %v3283_v16 }
 0x401   : > { %v1642_v12 = vadd.f32 %v3042_v7, %v4405_v5  ;;  %v1633_v15 = vpop.f32.mrb[9].mxu0  ;;  %3086 = vmatprep.subr.bf16.mxu1 %v3284_v27 }
 0x402   : > { %v1634_v51 = vadd.f32 %v4405_v5, %v1633_v15  ;;  %v3043_v24 = vpop.f32.mrb[10].mxu0 }
 0x403   : > { %v1645_v28 = vadd.f32 %v3043_v24, %v4405_v5  ;;  %v1636_v32 = vpop.f32.mrb[11].mxu0  ;;  %v1762_v39 = vmax.f32 %v1642_v12, 0.0 }
 0x404   : > { %v1637_v43 = vadd.f32 %v4405_v5, %v1636_v32  ;;  %3087 = vmatpush3.bf16.msra.mxu1 %v3284_v27  ;;  %v1760_v41 = vmax.f32 %v1634_v51, 0.0 }
 0x405   : > { %v1763_v35 = vmax.f32 %v1645_v28, 0.0 }
 0x406   : > { %v1761_v48 = vmax.f32 %v1637_v43, 0.0 }
 0x407   : > { %v1793_v20 = vpack.c.bf16 %v1763_v35, %v1762_v39 }
 0x408   : > { %v1792_v55 = vpack.c.bf16 %v1761_v48, %v1760_v41  ;;  %v3046_v59 = vpop.f32.mrb[12].mxu0 }
 0x409   : > { %v1658_v0 = vadd.f32 %v3046_v59, %v4405_v5  ;;  %v1649_v53 = vpop.f32.mrb[13].mxu0 }
 0x40a   : > { %v1650_v2 = vadd.f32 %v4405_v5, %v1649_v53  ;;  %v3047_v3 = vpop.f32.mrb[14].mxu0  ;;  %3088 = vmatprep.mubr.bf16.mxu1 %v1792_v55 }
 0x40b   : > { %v1661_v21 = vadd.f32 %v3047_v3, %v4405_v5  ;;  %v1652_v23 = vpop.f32.mrb[15].mxu0  ;;  %3089 = vmatmul.mubr.bf16.vlgmr.msra.gmra.mrb[36].mxu1 %v1793_v20  ;;  %v1766_v46 = vmax.f32 %v1658_v0, 0.0 }
 0x40c   : > { %v1653_v42 = vadd.f32 %v4405_v5, %v1652_v23  ;;  %v1764_v13 = vmax.f32 %v1650_v2, 0.0 }
 0x40d   : > { %v1767_v10 = vmax.f32 %v1661_v21, 0.0 }
 0x40e   : > { %v1765_v40 = vmax.f32 %v1653_v42, 0.0 }
 0x40f   : > { %v1795_v44 = vpack.c.bf16 %v1767_v10, %v1766_v46 }
 0x410   : > { %v1794_v19 = vpack.c.bf16 %v1765_v40, %v1764_v13  ;;  %v3050_v45 = vpop.f32.mrb[16].mxu0 }
 0x411   : > { %v1674_v25 = vadd.f32 %v3050_v45, %v4405_v5  ;;  %v1665_v11 = vpop.f32.mrb[17].mxu0 }
 0x412   : > { %v1666_v16 = vadd.f32 %v4405_v5, %v1665_v11  ;;  %v3051_v27 = vpop.f32.mrb[18].mxu0  ;;  %3092 = vmatprep.mubr.bf16.mxu1 %v1794_v19 }
 0x413   : > { %v1677_v7 = vadd.f32 %v3051_v27, %v4405_v5  ;;  %v1668_v12 = vpop.f32.mrb[19].mxu0  ;;  %3093 = vmatmul.mubr.bf16.gmra.mrb[40].mxu1 %v1795_v44  ;;  %v1770_v51 = vmax.f32 %v1674_v25, 0.0 }
 0x414   : > { %v1669_v15 = vadd.f32 %v4405_v5, %v1668_v12  ;;  %v1768_v28 = vmax.f32 %v1666_v16, 0.0 }
 0x415   : > { %v1771_v24 = vmax.f32 %v1677_v7, 0.0 }
 0x416   : > { %v1769_v32 = vmax.f32 %v1669_v15, 0.0 }
 0x417   : > { %v1797_v43 = vpack.c.bf16 %v1771_v24, %v1770_v51 }
 0x418   : > { %v1796_v39 = vpack.c.bf16 %v1769_v32, %v1768_v28  ;;  %v3054_v35 = vpop.f32.mrb[20].mxu0 }
 0x419   : > { %v1690_v41 = vadd.f32 %v3054_v35, %v4405_v5  ;;  %v1681_v48 = vpop.f32.mrb[21].mxu0 }
 0x41a   : > { %v1682_v20 = vadd.f32 %v4405_v5, %v1681_v48  ;;  %v3055_v55 = vpop.f32.mrb[22].mxu0  ;;  %3096 = vmatprep.mubr.bf16.mxu1 %v1796_v39 }
 0x41b   : > { %v1693_v59 = vadd.f32 %v3055_v55, %v4405_v5  ;;  %v1684_v0 = vpop.f32.mrb[23].mxu0  ;;  %3097 = vmatmul.mubr.bf16.gmra.mrb[44].mxu1 %v1797_v43  ;;  %v1774_v2 = vmax.f32 %v1690_v41, 0.0 }
 0x41c   : > { %v1685_v53 = vadd.f32 %v4405_v5, %v1684_v0  ;;  %v1772_v21 = vmax.f32 %v1682_v20, 0.0 }
 0x41d   : > { %v1775_v3 = vmax.f32 %v1693_v59, 0.0 }
 0x41e   : > { %v1773_v23 = vmax.f32 %v1685_v53, 0.0 }
 0x41f   : > { %v1799_v42 = vpack.c.bf16 %v1775_v3, %v1774_v2 }
 0x420   : > { %v1798_v46 = vpack.c.bf16 %v1773_v23, %v1772_v21  ;;  %v3058_v10 = vpop.f32.mrb[24].mxu0 }
 0x421   : > { %v1706_v13 = vadd.f32 %v3058_v10, %v4405_v5  ;;  %v1697_v40 = vpop.f32.mrb[25].mxu0 }
 0x422   : > { %v1698_v44 = vadd.f32 %v4405_v5, %v1697_v40  ;;  %v3059_v19 = vpop.f32.mrb[26].mxu0  ;;  %3100 = vmatprep.mubr.bf16.mxu1 %v1798_v46 }
 0x423   : > { %v1709_v45 = vadd.f32 %v3059_v19, %v4405_v5  ;;  %v1700_v25 = vpop.f32.mrb[27].mxu0  ;;  %3101 = vmatmul.mubr.bf16.gmra.mrb[48].mxu1 %v1799_v42  ;;  %v1778_v16 = vmax.f32 %v1706_v13, 0.0 }
 0x424   : > { %v1701_v11 = vadd.f32 %v4405_v5, %v1700_v25  ;;  %v1776_v7 = vmax.f32 %v1698_v44, 0.0 }
 0x425   : > { %v1779_v27 = vmax.f32 %v1709_v45, 0.0 }
 0x426   : > { %v1777_v12 = vmax.f32 %v1701_v11, 0.0 }
 0x427   : > { %v1801_v15 = vpack.c.bf16 %v1779_v27, %v1778_v16 }
 0x428   : > { %v1800_v51 = vpack.c.bf16 %v1777_v12, %v1776_v7  ;;  %v3062_v24 = vpop.f32.mrb[28].mxu0 }
 0x429   : > { %v1722_v28 = vadd.f32 %v3062_v24, %v4405_v5  ;;  %v1713_v32 = vpop.f32.mrb[29].mxu0 }
 0x42a   : > { %v1714_v43 = vadd.f32 %v4405_v5, %v1713_v32  ;;  %v3063_v39 = vpop.f32.mrb[30].mxu0  ;;  %3104 = vmatprep.mubr.bf16.mxu1 %v1800_v51 }
 0x42b   : > { %v1725_v35 = vadd.f32 %v3063_v39, %v4405_v5  ;;  %v1716_v41 = vpop.f32.mrb[31].mxu0  ;;  %3105 = vmatmul.mubr.bf16.gmra.mrb[52].mxu1 %v1801_v15  ;;  %v1782_v20 = vmax.f32 %v1722_v28, 0.0 }
 0x42c   : > { %v1717_v48 = vadd.f32 %v4405_v5, %v1716_v41  ;;  %v1780_v59 = vmax.f32 %v1714_v43, 0.0 }
 0x42d   : > { %v1783_v55 = vmax.f32 %v1725_v35, 0.0 }
 0x42e   : > { %v1781_v0 = vmax.f32 %v1717_v48, 0.0 }
 0x42f   : > { %v1803_v53 = vpack.c.bf16 %v1783_v55, %v1782_v20 }
 0x430   : > { %v1802_v2 = vpack.c.bf16 %v1781_v0, %v1780_v59  ;;  %v3066_v3 = vpop.f32.mrb[32].mxu0 }
 0x431   : > { %v1738_v21 = vadd.f32 %v3066_v3, %v4405_v5  ;;  %v1729_v23 = vpop.f32.mrb[33].mxu0 }
 0x432   : > { %v1730_v42 = vadd.f32 %v4405_v5, %v1729_v23  ;;  %v3067_v46 = vpop.f32.mrb[34].mxu0  ;;  %3108 = vmatprep.mubr.bf16.mxu1 %v1802_v2  ;;  %v2040_v2 = vlaneseq }
 0x433   : > { %v1741_v10 = vadd.f32 %v3067_v46, %v4405_v5  ;;  %v1732_v13 = vpop.f32.mrb[35].mxu0  ;;  %3109 = vmatmul.mubr.bf16.gmra.mrb[56].mxu1 %v1803_v53  ;;  %v1786_v44 = vmax.f32 %v1738_v21, 0.0  ;;  %v1439_v21 = vld [vmem:[%s4847_s5] sm:$0x1] }
 0x434   : > { %v1733_v40 = vadd.f32 %v4405_v5, %v1732_v13  ;;  %v1784_v45 = vmax.f32 %v1730_v42, 0.0  ;;  %v2041_v3 = vshrl.u32 %v2040_v2, 7  ;;  %v4445_v42 = vld [vmem:[%s4848_s8] ss:$0 sm:$0xff] }
 0x435   : > { %v1787_v19 = vmax.f32 %v1741_v10, 0.0 }
 0x436   : > { %v1785_v25 = vmax.f32 %v1733_v40, 0.0 }
 0x437   : > { %v1805_v11 = vpack.c.bf16 %v1787_v19, %v1786_v44 }
 0x438   : > { %v1804_v16 = vpack.c.bf16 %v1785_v25, %v1784_v45  ;;  %v3070_v27 = vpop.f32.mrb[36].mxu0 }
 0x439   : > { %v1754_v7 = vadd.f32 %v3070_v27, %v4405_v5  ;;  %v1745_v12 = vpop.f32.mrb[37].mxu0 }
 0x43a   : > { %v1746_v15 = vadd.f32 %v4405_v5, %v1745_v12  ;;  %v3071_v51 = vpop.f32.mrb[38].mxu0  ;;  %3112 = vmatprep.mubr.bf16.mxu1 %v1804_v16 }
 0x43b   : > { %v1757_v24 = vadd.f32 %v3071_v51, %v4405_v5  ;;  %v1748_v28 = vpop.f32.mrb[39].mxu0  ;;  %3113 = vmatmul.mubr.bf16.gmra.mrb[60].mxu1 %v1805_v11  ;;  %v1790_v43 = vmax.f32 %v1754_v7, 0.0  ;;  %v4456_v7 = vmul.f32 2.0, %v4183_v54  ;;  %v4460_v51 = vmul.f32 2.0, %v4187_v57 }
 0x43c   : > { %v1749_v32 = vadd.f32 %v4405_v5, %v1748_v28  ;;  %v1788_v35 = vmax.f32 %v1746_v15, 0.0  ;;  %v2042_v5 = vsub.s32 0, %v2041_v3  ;;  %v4476_v57 = vmul.f32 2.0, %v4214_v14 }
 0x43d   : > { %v1791_v39 = vmax.f32 %v1757_v24, 0.0  ;;  %v4463_v24 = vmul.f32 2.0, %v4191_v60  ;;  %v4489_v14 = vmul.f32 2.0, %v4237_v34  ;;  %v4502_v34 = vmul.f32 2.0, %v4256_v52 }
 0x43e   : > { %v1789_v41 = vmax.f32 %v1749_v32, 0.0  ;;  %v4505_v3 = vmul.f32 2.0, %v4261_v61  ;;  %v4521_v61 = vmul.f32 2.0, %v4280_v22 }
 0x43f   : > { %v1807_v48 = vpack.c.bf16 %v1791_v39, %v1790_v43  ;;  %v4467_v43 = vmul.f32 2.0, %v4195_v63  ;;  %v4470_v39 = vmul.f32 2.0, %v4205_v6  ;;  %v4482_v63 = vmul.f32 2.0, %v4228_v26 }
 0x440   : > { %v1806_v20 = vpack.c.bf16 %v1789_v41, %v1788_v35  ;;  %v4473_v35 = vmul.f32 2.0, %v4209_v9  ;;  %v4493_v26 = vmul.f32 2.0, %v4241_v37  ;;  %v2364_v37 = vld [vmem:[%s4034_s23] sm:$0xff] }
 0x442   : > { %3116 = vmatprep.mubr.bf16.mxu1 %v1806_v20  ;;  %v4486_v20 = vmul.f32 2.0, %v4232_v29 }
 0x443   : > { %3117 = vmatmul.mubr.bf16.gmra.mrb[64].mxu1 %v1807_v48  ;;  %v4479_v48 = vmul.f32 2.0, %v4218_v17 }
 0x4ba   : > { %v1522_v55 = vpop.f32.mrb[32].mxu1 }
 0x4bb   : > { %v3022_v59 = vpop.f32.mrb[33].mxu1  ;;  %v1523_v23 = vadd.f32 %v1522_v55, %v1439_v21  ;;  %v2367_v21 = vld [vmem:[%s4034_s23 + $0x18] sm:$0xff] }
 0x4bc   : > { %v1525_v0 = vpop.f32.mrb[34].mxu1  ;;  %v4496_v59 = vmul.f32 2.0, %v4252_v49 }
 0x4bd   : > { %v3023_v53 = vpop.f32.mrb[35].mxu1  ;;  %v4447_v10 = vrot.slane %v1523_v23, %v2042_v5  ;;  %v2366_v0 = vld [vmem:[%s4034_s23 + $0x10] sm:$0xff]  ;;  %v4512_v5 = vmul.f32 2.0, %v4265_v1 }
 0x4de   : > { %v3090_v46 = vpop.f32.mrb[36].mxu1 }
 0x4df   : > { %v1922_v13 = vadd.f32 %v3090_v46, %v4445_v42  ;;  %v1913_v40 = vpop.f32.mrb[37].mxu1  ;;  %v4515_v46 = vmul.f32 2.0, %v4276_v18  ;;  %v4530_v18 = vmul.f32 2.0, %v2367_v21 }
 0x4e0   : > { %v1914_v44 = vadd.f32 %v4445_v42, %v1913_v40  ;;  %v3091_v19 = vpop.f32.mrb[38].mxu1  ;;  %v2370_v40 = vld [vmem:[%s4034_s23 + $0x30] sm:$0xff] }
 0x4e1   : > { %v2046_v45 = vadd.f32 %v4447_v10, %v1922_v13  ;;  %v1925_v25 = vadd.f32 %v3091_v19, %v4445_v42  ;;  %v1916_v11 = vpop.f32.mrb[39].mxu1  ;;  %v2365_v13 = vld [vmem:[%s4034_s23 + $0x8] sm:$0xff]  ;;  %v4523_v19 = vmul.f32 2.0, %v2366_v0 }
 0x4e2   : > { %v2044_v16 = vadd.f32 %v4447_v10, %v1914_v44  ;;  %v1917_v27 = vadd.f32 %v4445_v42, %v1916_v11  ;;  %v2371_v11 = vld [vmem:[%s4034_s23 + $0x38] sm:$0xff] }
 0x4e3   : > { %v2810_v12 = vmul.f32 -1.442695, %v2046_v45  ;;  %v2047_v15 = vadd.f32 %v4447_v10, %v1925_v25  ;;  %v2368_v25 = vld [vmem:[%s4034_s23 + $0x20] sm:$0xff] }
 0x4e4   : > { %v2808_v28 = vmul.f32 -1.442695, %v2044_v16  ;;  %v2045_v32 = vadd.f32 %v4447_v10, %v1917_v27  ;;  %v4528_v16 = vmul.f32 2.0, %v2364_v37 }
 0x4e5   : > { %3285 = vpow2.f32 %v2810_v12  ;;  %v2811_v54 = vmul.f32 -1.442695, %v2047_v15  ;;  %v2369_v12 = vld [vmem:[%s4034_s23 + $0x28] sm:$0xff]  ;;  %v4533_v15 = vmul.f32 2.0, %v2365_v13  ;;  %v2372_v13 = vld [vmem:[%s4034_s23 + $0x40] sm:$0xff] }
 0x4e6   : > { %3287 = vpow2.f32 %v2808_v28  ;;  %v2809_v60 = vmul.f32 -1.442695, %v2045_v32  ;;  %v3094_v41 = vpop.f32.mrb[40].mxu1  ;;  %v4535_v28 = vmul.f32 2.0, %v2370_v40 }
 0x4e7   : > { %3289 = vpow2.f32 %v2811_v54  ;;  %v1938_v6 = vadd.f32 %v3094_v41, %v4445_v42  ;;  %v1929_v9 = vpop.f32.mrb[41].mxu1  ;;  %v2374_v54 = vld [vmem:[%s4034_s23 + $0x50] sm:$0xff]  ;;  %v4538_v41 = vmul.f32 2.0, %v2368_v25 }
 0x4e8   : > { %3291 = vpow2.f32 %v2809_v60  ;;  %v1930_v55 = vadd.f32 %v4445_v42, %v1929_v9  ;;  %v3095_v17 = vpop.f32.mrb[42].mxu1 }
 0x4e9   : > { %v2050_v53 = vadd.f32 %v4447_v10, %v1938_v6  ;;  %v1941_v29 = vadd.f32 %v3095_v17, %v4445_v42  ;;  %v1932_v2 = vpop.f32.mrb[43].mxu1  ;;  %v4540_v6 = vmul.f32 2.0, %v2371_v11  ;;  %v2375_v11 = vld [vmem:[%s4034_s23 + $0x58] sm:$0xff] }
 0x4ea   : > { %v2048_v23 = vadd.f32 %v4447_v10, %v1930_v55  ;;  %v1933_v49 = vadd.f32 %v4445_v42, %v1932_v2 }
 0x4eb   : > { %v2814_v52 = vmul.f32 -1.442695, %v2050_v53  ;;  %v2051_v44 = vadd.f32 %v4447_v10, %v1941_v29  ;;  %v4543_v53 = vmul.f32 2.0, %v2369_v12 }
 0x4ec   : > { %v2812_v45 = vmul.f32 -1.442695, %v2048_v23  ;;  %v2049_v1 = vadd.f32 %v4447_v10, %v1933_v49  ;;  %v4547_v49 = vmul.f32 2.0, %v2374_v54  ;;  %v2378_v54 = vld [vmem:[%s4034_s23 + $0x70] sm:$0xff] }
 0x4ed   : > { %3293 = vpow2.f32 %v2814_v52  ;;  %v2815_v27 = vmul.f32 -1.442695, %v2051_v44 }
 0x4ee   : > { %3295 = vpow2.f32 %v2812_v45  ;;  %v2813_v22 = vmul.f32 -1.442695, %v2049_v1  ;;  %v3098_v32 = vpop.f32.mrb[44].mxu1 }
 0x4ef   : > { %v3286_v60 = vpop.eup %3285  ;;  %3297 = vpow2.f32 %v2815_v27  ;;  %v1954_v9 = vadd.f32 %v3098_v32, %v4445_v42  ;;  %v1945_v55 = vpop.f32.mrb[45].mxu1  ;;  %v2373_v27 = vld [vmem:[%s4034_s23 + $0x48] sm:$0xff] }
 0x4f0   : > { %v3288_v17 = vpop.eup %3287  ;;  %v2174_v0 = vadd.f32 1.0, %v3286_v60  ;;  %3299 = vpow2.f32 %v2813_v22  ;;  %v1946_v29 = vadd.f32 %v4445_v42, %v1945_v55  ;;  %v3099_v2 = vpop.f32.mrb[46].mxu1  ;;  %v2376_v60 = vld [vmem:[%s4034_s23 + $0x60] sm:$0xff]  ;;  %v4558_v55 = vmul.f32 2.0, %v2372_v13 }
 0x4f1   : > { %v3290_v37 = vpop.eup %3289  ;;  %v2172_v21 = vadd.f32 1.0, %v3288_v17  ;;  %v2054_v23 = vadd.f32 %v4447_v10, %v1954_v9  ;;  %v1957_v52 = vadd.f32 %v3099_v2, %v4445_v42  ;;  %v1948_v40 = vpop.f32.mrb[47].mxu1 }
 0x4f2   : > { %v3292_v44 = vpop.eup %3291  ;;  %3301 = vrcp.f32 %v2174_v0  ;;  %v2175_v45 = vadd.f32 1.0, %v3290_v37  ;;  %v2052_v25 = vadd.f32 %v4447_v10, %v1946_v29  ;;  %v1949_v1 = vadd.f32 %v4445_v42, %v1948_v40  ;;  %v2379_v0 = vld [vmem:[%s4034_s23 + $0x78] sm:$0xff]  ;;  %v2377_v29 = vld [vmem:[%s4034_s23 + $0x68] sm:$0xff]  ;;  %v2382_v40 = vld [vmem:[%s4034_s23 + $0x90] sm:$0xff] }
 0x4f3   : > { %3303 = vrcp.f32 %v2172_v21  ;;  %v2173_v12 = vadd.f32 1.0, %v3292_v44  ;;  %v2818_v22 = vmul.f32 -1.442695, %v2054_v23  ;;  %v2055_v32 = vadd.f32 %v4447_v10, %v1957_v52 }
 0x4f4   : > { %3305 = vrcp.f32 %v2175_v45  ;;  %v2816_v9 = vmul.f32 -1.442695, %v2052_v25  ;;  %v2053_v17 = vadd.f32 %v4447_v10, %v1949_v1  ;;  %v4563_v37 = vmul.f32 2.0, %v2375_v11 }
 0x4f5   : > { %3307 = vrcp.f32 %v2173_v12  ;;  %v2819_v2 = vmul.f32 -1.442695, %v2055_v32  ;;  %v4565_v21 = vmul.f32 2.0, %v2373_v27  ;;  %v4568_v44 = vmul.f32 2.0, %v2378_v54 }
 0x4f6   : > { %3309 = vpow2.f32 %v2818_v22  ;;  %v2817_v23 = vmul.f32 -1.442695, %v2053_v17  ;;  %v3102_v52 = vpop.f32.mrb[48].mxu1  ;;  %v4570_v45 = vmul.f32 2.0, %v2376_v60  ;;  %v4573_v12 = vmul.f32 2.0, %v2379_v0  ;;  %v2380_v0 = vld [vmem:[%s4034_s23 + $0x80] sm:$0xff] }
 0x4f7   : > { %v3294_v13 = vpop.eup %3293  ;;  %3311 = vpow2.f32 %v2816_v9  ;;  %v1970_v25 = vadd.f32 %v3102_v52, %v4445_v42  ;;  %v1961_v1 = vpop.f32.mrb[49].mxu1  ;;  %v4575_v11 = vmul.f32 2.0, %v2377_v29  ;;  %v4578_v54 = vmul.f32 2.0, %v2382_v40 }
 0x4f8   : > { %v3296_v27 = vpop.eup %3295  ;;  %v2178_v32 = vadd.f32 1.0, %v3294_v13  ;;  %3313 = vpow2.f32 %v2819_v2  ;;  %v1962_v22 = vadd.f32 %v4445_v42, %v1961_v1  ;;  %v3103_v17 = vpop.f32.mrb[50].mxu1 }
 0x4f9   : > { %v3298_v60 = vpop.eup %3297  ;;  %v2176_v62 = vadd.f32 1.0, %v3296_v27  ;;  %3315 = vpow2.f32 %v2817_v23  ;;  %v2058_v9 = vadd.f32 %v4447_v10, %v1970_v25  ;;  %v1973_v52 = vadd.f32 %v3103_v17, %v4445_v42  ;;  %v1964_v38 = vpop.f32.mrb[51].mxu1 }
 0x4fa   : > { %v3300_v58 = vpop.eup %3299  ;;  %3317 = vrcp.f32 %v2178_v32  ;;  %v2179_v29 = vadd.f32 1.0, %v3298_v60  ;;  %v2056_v13 = vadd.f32 %v4447_v10, %v1962_v22  ;;  %v1965_v2 = vadd.f32 %v4445_v42, %v1964_v38 }
 0x4fb   : > { %3319 = vrcp.f32 %v2176_v62  ;;  %v2177_v1 = vadd.f32 1.0, %v3300_v58  ;;  %v2822_v40 = vmul.f32 -1.442695, %v2058_v9  ;;  %v2059_v47 = vadd.f32 %v4447_v10, %v1973_v52 }
 0x4fc   : > { %v3302_v27 = vpop.eup %3301  ;;  %3321 = vrcp.f32 %v2179_v29  ;;  %v2820_v23 = vmul.f32 -1.442695, %v2056_v13  ;;  %v2057_v25 = vadd.f32 %v4447_v10, %v1965_v2  ;;  %v4587_v17 = vmul.f32 2.0, %v2380_v0 }
 0x4fd   : > { %v3304_v36 = vpop.eup %3303  ;;  %v2334_v32 = vmul.f32 %v3302_v27, %v4456_v7  ;;  %v2430_v60 = vsub.f32 1.0, %v3302_v27  ;;  %3323 = vrcp.f32 %v2177_v1  ;;  %v2823_v22 = vmul.f32 -1.442695, %v2059_v47 }
 0x4fe   : > { %v3306_v31 = vpop.eup %3305  ;;  %v2332_v38 = vmul.f32 %v3304_v36, %v4460_v51  ;;  %v2428_v58 = vsub.f32 1.0, %v3304_v36  ;;  %3325 = vpow2.f32 %v2822_v40  ;;  %v2821_v62 = vmul.f32 -1.442695, %v2057_v25  ;;  %v3106_v9 = vpop.f32.mrb[52].mxu1 }
 0x4ff   : > { %v3308_v52 = vpop.eup %3307  ;;  %v2462_v29 = vmul.f32 %v2430_v60, %v4523_v19  ;;  %v2335_v13 = vmul.f32 %v3306_v31, %v4463_v24  ;;  %v2431_v0 = vsub.f32 1.0, %v3306_v31  ;;  %3327 = vpow2.f32 %v2820_v23  ;;  %v1977_v2 = vpop.f32.mrb[53].mxu1 }
 0x500   : > { %v3310_v8 = vpop.eup %3309  ;;  %v2460_v7 = vmul.f32 %v2428_v58, %v4528_v16  ;;  %v2333_v47 = vmul.f32 %v3308_v52, %v4467_v43  ;;  %v2429_v1 = vsub.f32 1.0, %v3308_v52  ;;  %3329 = vpow2.f32 %v2823_v22  ;;  %v4595_v51 = vpop.f32.mrb[54].mxu1 }
 0x501   : > { %v3312_v36 = vpop.eup %3311  ;;  %v2494_v40 = vadd.f32 %v2462_v29, %v2334_v32  ;;  %v2463_v27 = vmul.f32 %v2431_v0, %v4530_v18  ;;  %v2182_v25 = vadd.f32 1.0, %v3310_v8  ;;  %3331 = vpow2.f32 %v2821_v62  ;;  %v1980_v19 = vpop.f32.mrb[55].mxu1 }
 0x502   : > { %v3314_v24 = vpop.eup %3313  ;;  %v2492_v31 = vadd.f32 %v2460_v7, %v2332_v38  ;;  %v2461_v23 = vmul.f32 %v2429_v1, %v4533_v15  ;;  %v2180_v60 = vadd.f32 1.0, %v3312_v36  ;;  %v1986_v16 = vadd.f32 %v3106_v9, %v4445_v42 }
 0x503   : > { %v3316_v58 = vpop.eup %3315  ;;  %v2495_v43 = vadd.f32 %v2463_v27, %v2335_v13  ;;  %3333 = vrcp.f32 %v2182_v25  ;;  %v2183_v22 = vadd.f32 1.0, %v3314_v24  ;;  %v1978_v52 = vadd.f32 %v4445_v42, %v1977_v2 }
 0x504   : > { %v3318_v4 = vpop.eup %3317  ;;  %v2493_v32 = vadd.f32 %v2461_v23, %v2333_v47  ;;  %3335 = vrcp.f32 %v2180_v60  ;;  %v2181_v18 = vadd.f32 1.0, %v3316_v58  ;;  %v2062_v8 = vadd.f32 %v4447_v10, %v1986_v16 }
 0x505   : > { %v3320_v62 = vpop.eup %3319  ;;  %v2338_v38 = vmul.f32 %v3318_v4, %v4470_v39  ;;  %v2434_v29 = vsub.f32 1.0, %v3318_v4  ;;  %3337 = vrcp.f32 %v2183_v22  ;;  %v2060_v15 = vadd.f32 %v4447_v10, %v1978_v52 }
 0x506   : > { %v3322_v9 = vpop.eup %3321  ;;  %v2524_v0 = vadd.f32 %v2493_v32, %v2492_v31  ;;  %v2336_v13 = vmul.f32 %v3320_v62, %v4473_v35  ;;  %v2432_v7 = vsub.f32 1.0, %v3320_v62  ;;  %3339 = vrcp.f32 %v2181_v18  ;;  %v3110_v2 = vpop.f32.mrb[56].mxu1 }
 0x507   : > { %v3324_v1 = vpop.eup %3323  ;;  %v2466_v47 = vmul.f32 %v2434_v29, %v4535_v28  ;;  %v2339_v36 = vmul.f32 %v3322_v9, %v4476_v57  ;;  %v2435_v27 = vsub.f32 1.0, %v3322_v9  ;;  %v2826_v25 = vmul.f32 -1.442695, %v2062_v8  ;;  %v4607_v24 = vpop.f32.mrb[57].mxu1 }
 0x508   : > { %v3326_v4 = vpop.eup %3325  ;;  %v2525_v39 = vadd.f32 %v2524_v0, %v2494_v40  ;;  %v2464_v23 = vmul.f32 %v2432_v7, %v4538_v41  ;;  %v2337_v31 = vmul.f32 %v3324_v1, %v4479_v48  ;;  %v2433_v60 = vsub.f32 1.0, %v3324_v1  ;;  %v4611_v35 = vpop.f32.mrb[58].mxu1 }
 0x509   : > { %v3328_v16 = vpop.eup %3327  ;;  %v2498_v58 = vadd.f32 %v2466_v47, %v2338_v38  ;;  %v2467_v22 = vmul.f32 %v2435_v27, %v4540_v6  ;;  %v2186_v28 = vadd.f32 1.0, %v3326_v4  ;;  %3341 = vpow2.f32 %v2826_v25  ;;  %v4614_v57 = vpop.f32.mrb[59].mxu1 }
 0x50a   : > { %v3330_v52 = vpop.eup %3329  ;;  %v2496_v32 = vadd.f32 %v2464_v23, %v2336_v13  ;;  %v2526_v18 = vadd.f32 %v2525_v39, %v2495_v43  ;;  %v2465_v40 = vmul.f32 %v2433_v60, %v4543_v53  ;;  %v2184_v8 = vadd.f32 1.0, %v3328_v16 }
 0x50b   : > { %v3332_v41 = vpop.eup %3331  ;;  %v2499_v62 = vadd.f32 %v2467_v22, %v2339_v36  ;;  %3343 = vrcp.f32 %v2186_v28  ;;  %v2187_v48 = vadd.f32 1.0, %v3330_v52  ;;  %v2824_v29 = vmul.f32 -1.442695, %v2060_v15 }
 0x50c   : > { %v2527_v9 = vadd.f32 %v2526_v18, %v2496_v32  ;;  %v2497_v0 = vadd.f32 %v2465_v40, %v2337_v31  ;;  %3345 = vrcp.f32 %v2184_v8  ;;  %v2185_v38 = vadd.f32 1.0, %v3332_v41 }
 0x50d   : > { %v3334_v6 = vpop.eup %3333  ;;  %3347 = vrcp.f32 %v2187_v48  ;;  %v1989_v7 = vadd.f32 %v4595_v51, %v4445_v42  ;;  %v1981_v13 = vadd.f32 %v4445_v42, %v1980_v19  ;;  %v2002_v43 = vadd.f32 %v3110_v2, %v4445_v42 }
 0x50e   : > { %v3336_v53 = vpop.eup %3335  ;;  %v2528_v1 = vadd.f32 %v2527_v9, %v2497_v0  ;;  %v2342_v47 = vmul.f32 %v3334_v6, %v4482_v63  ;;  %v2438_v36 = vsub.f32 1.0, %v3334_v6  ;;  %3349 = vrcp.f32 %v2185_v38  ;;  %v4622_v15 = vpop.f32.mrb[60].mxu1 }
 0x50f   : > { %v3338_v27 = vpop.eup %3337  ;;  %v2340_v25 = vmul.f32 %v3336_v53, %v4486_v20  ;;  %v2436_v4 = vsub.f32 1.0, %v3336_v53  ;;  %3351 = vpow2.f32 %v2824_v29  ;;  %v2063_v39 = vadd.f32 %v4447_v10, %v1989_v7  ;;  %v4626_v51 = vpop.f32.mrb[61].mxu1 }
 0x510   : > { %v3340_v19 = vpop.eup %3339  ;;  %v2529_v23 = vadd.f32 %v2528_v1, %v2498_v58  ;;  %v2470_v2 = vmul.f32 %v2438_v36, %v4547_v49  ;;  %v2343_v31 = vmul.f32 %v3338_v27, %v4489_v14  ;;  %v2439_v63 = vsub.f32 1.0, %v3338_v27  ;;  %v4630_v60 = vpop.f32.mrb[62].mxu1 }
 0x511   : > { %v2468_v16 = vmul.f32 %v2436_v4, %v4558_v55  ;;  %v2341_v22 = vmul.f32 %v3340_v19, %v4493_v26  ;;  %v2437_v20 = vsub.f32 1.0, %v3340_v19  ;;  %v2827_v28 = vmul.f32 -1.442695, %v2063_v39  ;;  %v4634_v52 = vpop.f32.mrb[63].mxu1 }
 0x512   : > { %v2502_v32 = vadd.f32 %v2470_v2, %v2342_v47  ;;  %v2530_v18 = vadd.f32 %v2529_v23, %v2499_v62  ;;  %v2471_v40 = vmul.f32 %v2439_v63, %v4563_v37  ;;  %v2061_v58 = vadd.f32 %v4447_v10, %v1981_v13 }
 0x513   : > { %v3342_v49 = vpop.eup %3341  ;;  %v2500_v8 = vadd.f32 %v2468_v16, %v2340_v25  ;;  %v2469_v14 = vmul.f32 %v2437_v20, %v4565_v21  ;;  %3353 = vpow2.f32 %v2827_v28  ;;  %v2066_v41 = vadd.f32 %v4447_v10, %v2002_v43 }
 0x514   : > { %v2503_v55 = vadd.f32 %v2471_v40, %v2343_v31  ;;  %v2190_v48 = vadd.f32 1.0, %v3342_v49  ;;  %v2825_v26 = vmul.f32 -1.442695, %v2061_v58  ;;  %v1994_v29 = vadd.f32 %v4445_v42, %v4607_v24 }
 0x515   : > { %v3344_v9 = vpop.eup %3343  ;;  %v2531_v0 = vadd.f32 %v2530_v18, %v2500_v8  ;;  %v2501_v62 = vadd.f32 %v2469_v14, %v2341_v22  ;;  %v2830_v38 = vmul.f32 -1.442695, %v2066_v41  ;;  %v2005_v37 = vadd.f32 %v4611_v35, %v4445_v42 }
 0x516   : > { %v3346_v6 = vpop.eup %3345  ;;  %v2346_v7 = vmul.f32 %v3344_v9, %v4496_v59  ;;  %v2442_v21 = vsub.f32 1.0, %v3344_v9  ;;  %3355 = vrcp.f32 %v2190_v48  ;;  %v2064_v13 = vadd.f32 %v4447_v10, %v1994_v29  ;;  %v4646_v43 = vpop.f32.mrb[64].mxu1 }
 0x517   : > { %v3348_v53 = vpop.eup %3347  ;;  %v2532_v1 = vadd.f32 %v2531_v0, %v2501_v62  ;;  %v2344_v24 = vmul.f32 %v3346_v6, %v4502_v34  ;;  %v2440_v47 = vsub.f32 1.0, %v3346_v6  ;;  %3357 = vpow2.f32 %v2825_v26  ;;  %v4649_v36 = vpop.f32.mrb[65].mxu1 }
 0x518   : > { %v3350_v27 = vpop.eup %3349  ;;  %v2474_v35 = vmul.f32 %v2442_v21, %v4568_v44  ;;  %v2347_v25 = vmul.f32 %v3348_v53, %v4505_v3  ;;  %v2443_v59 = vsub.f32 1.0, %v3348_v53  ;;  %3359 = vpow2.f32 %v2830_v38  ;;  %v3119_v4 = vpop.f32.mrb[66].mxu1 }
 0x519   : > { %v3352_v39 = vpop.eup %3351  ;;  %v2533_v19 = vadd.f32 %v2532_v1, %v2502_v32  ;;  %v2472_v23 = vmul.f32 %v2440_v47, %v4570_v45  ;;  %v2345_v2 = vmul.f32 %v3350_v27, %v4512_v5  ;;  %v2441_v31 = vsub.f32 1.0, %v3350_v27  ;;  %v2028_v34 = vpop.f32.mrb[67].mxu1 }
 0x51a   : > { %v2506_v63 = vadd.f32 %v2474_v35, %v2346_v7  ;;  %v2475_v16 = vmul.f32 %v2443_v59, %v4573_v12  ;;  %v2188_v22 = vadd.f32 1.0, %v3352_v39  ;;  %v2828_v20 = vmul.f32 -1.442695, %v2064_v13  ;;  %v2383_v59 = vld [vmem:[%s4034_s23 + $0x98] sm:$0xff] }
 0x51b   : > { %v2504_v28 = vadd.f32 %v2472_v23, %v2344_v24  ;;  %v2534_v44 = vadd.f32 %v2533_v19, %v2503_v55  ;;  %v2473_v3 = vmul.f32 %v2441_v31, %v4575_v11  ;;  %v2067_v18 = vadd.f32 %v4447_v10, %v2005_v37 }
 0x51c   : > { %v2507_v40 = vadd.f32 %v2475_v16, %v2347_v25  ;;  %3361 = vrcp.f32 %v2188_v22  ;;  %v1997_v45 = vadd.f32 %v4445_v42, %v4614_v57  ;;  %v2018_v5 = vadd.f32 %v4622_v15, %v4445_v42 }
 0x51d   : > { %v3354_v32 = vpop.eup %3353  ;;  %v2535_v58 = vadd.f32 %v2534_v44, %v2504_v28  ;;  %v2505_v49 = vadd.f32 %v2473_v3, %v2345_v2  ;;  %3363 = vpow2.f32 %v2828_v20  ;;  %v2831_v12 = vmul.f32 -1.442695, %v2067_v18  ;;  %v2381_v20 = vld [vmem:[%s4034_s23 + $0x88] sm:$0xff] }
 0x51e   : > { %v2191_v8 = vadd.f32 1.0, %v3354_v32  ;;  %v2065_v14 = vadd.f32 %v4447_v10, %v1997_v45  ;;  %v2070_v11 = vadd.f32 %v4447_v10, %v2018_v5  ;;  %v2010_v41 = vadd.f32 %v4445_v42, %v4626_v51  ;;  %v2386_v45 = vld [vmem:[%s4034_s23 + $0xb0] sm:$0xff] }
 0x51f   : > { %v2536_v55 = vadd.f32 %v2535_v58, %v2505_v49  ;;  %3365 = vpow2.f32 %v2831_v12  ;;  %v2021_v57 = vadd.f32 %v4630_v60, %v4445_v42  ;;  %v2013_v15 = vadd.f32 %v4445_v42, %v4634_v52 }
 0x520   : > { %v3356_v48 = vpop.eup %3355  ;;  %3367 = vrcp.f32 %v2191_v8  ;;  %v2829_v26 = vmul.f32 -1.442695, %v2065_v14  ;;  %v2834_v29 = vmul.f32 -1.442695, %v2070_v11  ;;  %v2068_v9 = vadd.f32 %v4447_v10, %v2010_v41 }
 0x521   : > { %v3358_v0 = vpop.eup %3357  ;;  %v2537_v62 = vadd.f32 %v2536_v55, %v2506_v63  ;;  %v2350_v38 = vmul.f32 %v3356_v48, %v4515_v46  ;;  %v2446_v37 = vsub.f32 1.0, %v3356_v48  ;;  %v2071_v51 = vadd.f32 %v4447_v10, %v2021_v57 }
 0x522   : > { %v3360_v6 = vpop.eup %3359  ;;  %v2189_v7 = vadd.f32 1.0, %v3358_v0  ;;  %3369 = vpow2.f32 %v2829_v26  ;;  %v2832_v60 = vmul.f32 -1.442695, %v2068_v9  ;;  %v2069_v52 = vadd.f32 %v4447_v10, %v2013_v15  ;;  %v2384_v0 = vld [vmem:[%s4034_s23 + $0xa0] sm:$0xff] }
 0x523   : > { %v2478_v21 = vmul.f32 %v2446_v37, %v4578_v54  ;;  %v2538_v13 = vadd.f32 %v2537_v62, %v2507_v40  ;;  %v2194_v53 = vadd.f32 1.0, %v3360_v6  ;;  %3371 = vpow2.f32 %v2834_v29  ;;  %v2387_v37 = vld [vmem:[%s4034_s23 + $0xb8] sm:$0xff] }
 0x524   : > { %3373 = vrcp.f32 %v2189_v7  ;;  %v2835_v1 = vmul.f32 -1.442695, %v2071_v51  ;;  %v2833_v24 = vmul.f32 -1.442695, %v2069_v52  ;;  %v2034_v46 = vadd.f32 %v4646_v43, %v4445_v42 }
 0x525   : > { %v4677_v47 = vadd.f32 %v2478_v21, %v2350_v38  ;;  %3375 = vrcp.f32 %v2194_v53  ;;  %v2026_v27 = vadd.f32 %v4445_v42, %v4649_v36  ;;  %v2037_v35 = vadd.f32 %v3119_v4, %v4445_v42 }
 0x526   : > { %v3362_v25 = vpop.eup %3361  ;;  %v2319_v54 = vmul.f32 2.0, %v4285_v30  ;;  %3377 = vpow2.f32 %v2832_v60  ;;  %v2074_v39 = vadd.f32 %v4447_v10, %v2034_v46  ;;  %v2029_v19 = vadd.f32 %v4445_v42, %v2028_v34 }
 0x527   : > { %v3364_v23 = vpop.eup %3363  ;;  %v2348_v43 = vmul.f32 %v3362_v25, %v4521_v61  ;;  %v2444_v2 = vsub.f32 1.0, %v3362_v25  ;;  %3379 = vpow2.f32 %v2835_v1  ;;  %v2072_v31 = vadd.f32 %v4447_v10, %v2026_v27  ;;  %v4849_v1 = vld [vmem:[#allocation24_spill] sm:$0xff] }
 0x528   : > { %v2192_v36 = vadd.f32 1.0, %v3364_v23  ;;  %3381 = vpow2.f32 %v2833_v24  ;;  %v2838_v4 = vmul.f32 -1.442695, %v2074_v39  ;;  %v2075_v30 = vadd.f32 %v4447_v10, %v2037_v35  ;;  %v2390_v39 = vld [vmem:[%s4034_s23 + $0xd0] sm:$0xff] }
 0x529   : > { %v3366_v63 = vpop.eup %3365  ;;  %v2476_v16 = vmul.f32 %v2444_v2, %v4587_v17  ;;  %v2415_v22 = vmul.f32 2.0, %v2383_v59  ;;  %v2836_v28 = vmul.f32 -1.442695, %v2072_v31  ;;  %v2073_v42 = vadd.f32 %v4447_v10, %v2029_v19  ;;  %v4850_v23 = vld [vmem:[#allocation25_spill] sm:$0xff]  ;;  %v4851_v2 = vld [vmem:[#allocation26_spill] sm:$0xff] }
 0x52a   : > { %v3368_v34 = vpop.eup %3367  ;;  %3383 = vrcp.f32 %v2192_v36  ;;  %v2195_v61 = vadd.f32 1.0, %v3366_v63  ;;  %v2839_v44 = vmul.f32 -1.442695, %v2075_v30  ;;  %v2317_v32 = vmul.f32 2.0, %v4289_v33  ;;  %v4852_v36 = vld [vmem:[#allocation27_spill] sm:$0xff] }
 0x52b   : > { %v2508_v3 = vadd.f32 %v2476_v16, %v2348_v43  ;;  %v2351_v18 = vmul.f32 %v3368_v34, %v2319_v54  ;;  %v2447_v40 = vsub.f32 1.0, %v3368_v34  ;;  %3385 = vpow2.f32 %v2838_v4 }
 0x52c   : > { %v3370_v5 = vpop.eup %3369  ;;  %v2413_v58 = vmul.f32 2.0, %v2381_v20  ;;  %3387 = vrcp.f32 %v2195_v61  ;;  %v2837_v17 = vmul.f32 -1.442695, %v2073_v42  ;;  %v2322_v11 = vmul.f32 2.0, %v4300_v50 }
 0x52d   : > { %v3372_v49 = vpop.eup %3371  ;;  %v2539_v12 = vadd.f32 %v2538_v13, %v2508_v3  ;;  %v2479_v8 = vmul.f32 %v2447_v40, %v2415_v22  ;;  %v2193_v10 = vadd.f32 1.0, %v3370_v5  ;;  %3389 = vpow2.f32 %v2836_v28  ;;  %v2388_v5 = vld [vmem:[%s4034_s23 + $0xc0] sm:$0xff] }
 0x52e   : > { %v3374_v14 = vpop.eup %3373  ;;  %v2418_v41 = vmul.f32 2.0, %v2386_v45  ;;  %v2198_v55 = vadd.f32 1.0, %v3372_v49  ;;  %3391 = vpow2.f32 %v2839_v44  ;;  %v2320_v6 = vmul.f32 2.0, %v4304_v56  ;;  %v2385_v56 = vld [vmem:[%s4034_s23 + $0xa8] sm:$0xff] }
 0x52f   : > { %v3376_v57 = vpop.eup %3375  ;;  %v2511_v15 = vadd.f32 %v2479_v8, %v2351_v18  ;;  %v2349_v48 = vmul.f32 %v3374_v14, %v2317_v32  ;;  %v2445_v33 = vsub.f32 1.0, %v3374_v14  ;;  %3393 = vrcp.f32 %v2193_v10  ;;  %v2391_v8 = vld [vmem:[%s4034_s23 + $0xd8] sm:$0xff]  ;;  %v2389_v10 = vld [vmem:[%s4034_s23 + $0xc8] sm:$0xff] }
 0x530   : > { %v3378_v26 = vpop.eup %3377  ;;  %v2354_v29 = vmul.f32 %v3376_v57, %v2322_v11  ;;  %v2450_v9 = vsub.f32 1.0, %v3376_v57  ;;  %3395 = vrcp.f32 %v2198_v55  ;;  %v2416_v21 = vmul.f32 2.0, %v2384_v0 }
 0x531   : > { %v3380_v62 = vpop.eup %3379  ;;  %v2477_v38 = vmul.f32 %v2445_v33, %v2413_v58  ;;  %v2196_v51 = vadd.f32 1.0, %v3378_v26  ;;  %3397 = vpow2.f32 %v2837_v17  ;;  %v2323_v24 = vmul.f32 2.0, %v4849_v1  ;;  %v4853_v17 = vld [vmem:[#allocation28_spill] sm:$0xff] }
 0x532   : > { %v3382_v50 = vpop.eup %3381  ;;  %v2482_v7 = vmul.f32 %v2450_v9, %v2418_v41  ;;  %v2199_v60 = vadd.f32 1.0, %v3380_v62  ;;  %v2419_v27 = vmul.f32 2.0, %v2387_v37  ;;  %v2321_v43 = vmul.f32 2.0, %v4850_v23 }
 0x533   : > { %v2509_v52 = vadd.f32 %v2477_v38, %v2349_v48  ;;  %3399 = vrcp.f32 %v2196_v51  ;;  %v2197_v13 = vadd.f32 1.0, %v3382_v50  ;;  %v2326_v31 = vmul.f32 2.0, %v4851_v2 }
 0x534   : > { %v3384_v53 = vpop.eup %3383  ;;  %v4699_v46 = vadd.f32 %v2482_v7, %v2354_v29  ;;  %3401 = vrcp.f32 %v2199_v60  ;;  %v2324_v4 = vmul.f32 2.0, %v4852_v36  ;;  %v2417_v34 = vmul.f32 2.0, %v2385_v56  ;;  %v4854_v29 = vld [vmem:[#allocation29_spill] sm:$0xff]  ;;  %v2395_v36 = vld [vmem:[%s4034_s23 + $0xf8] sm:$0xff] }
 0x535   : > { %v3386_v35 = vpop.eup %3385  ;;  %v2540_v25 = vadd.f32 %v2539_v12, %v2509_v52  ;;  %v2352_v54 = vmul.f32 %v3384_v53, %v2320_v6  ;;  %v2448_v59 = vsub.f32 1.0, %v3384_v53  ;;  %3403 = vrcp.f32 %v2197_v13  ;;  %v2394_v7 = vld [vmem:[%s4034_s23 + $0xf0] sm:$0xff] }
 0x536   : > { %v3388_v19 = vpop.eup %3387  ;;  %v2202_v30 = vadd.f32 1.0, %v3386_v35  ;;  %v2422_v61 = vmul.f32 2.0, %v2390_v39  ;;  %v2327_v49 = vmul.f32 2.0, %v4853_v17  ;;  %v2420_v33 = vmul.f32 2.0, %v2388_v5  ;;  %v2392_v35 = vld [vmem:[%s4034_s23 + $0xe0] sm:$0xff]  ;;  %v4858_v5 = vld [vmem:[#allocation33_spill] sm:$0xff] }
 0x537   : > { %v3390_v63 = vpop.eup %3389  ;;  %v2541_v16 = vadd.f32 %v2540_v25, %v4677_v47  ;;  %v2480_v22 = vmul.f32 %v2448_v59, %v2416_v21  ;;  %v2355_v20 = vmul.f32 %v3388_v19, %v2323_v24  ;;  %v2451_v28 = vsub.f32 1.0, %v3388_v19  ;;  %v4855_v25 = vld [vmem:[#allocation30_spill] sm:$0xff]  ;;  %v4856_v19 = vld [vmem:[#allocation31_spill] sm:$0xff] }
 0x538   : > { %v3392_v42 = vpop.eup %3391  ;;  %3405 = vrcp.f32 %v2202_v30  ;;  %v2200_v44 = vadd.f32 1.0, %v3390_v63  ;;  %v2325_v9 = vmul.f32 2.0, %v4854_v29  ;;  %v2423_v62 = vmul.f32 2.0, %v2391_v8 }
 0x539   : > { %v3394_v3 = vpop.eup %3393  ;;  %v2512_v18 = vadd.f32 %v2480_v22, %v2352_v54  ;;  %v2542_v40 = vadd.f32 %v2541_v16, %v2511_v15  ;;  %v2483_v45 = vmul.f32 %v2451_v28, %v2419_v27  ;;  %v2203_v32 = vadd.f32 1.0, %v3392_v42  ;;  %v2393_v22 = vld [vmem:[%s4034_s23 + $0xe8] sm:$0xff]  ;;  %s2840_s23 = sshll.u32 %s3773_s29, 4  ;;  %s3681_s29 = smov [#allocation15]  }
 0x53a   : > { %v3396_v58 = vpop.eup %3395  ;;  %v2353_v47 = vmul.f32 %v3394_v3, %v2321_v43  ;;  %v2449_v12 = vsub.f32 1.0, %v3394_v3  ;;  %3407 = vrcp.f32 %v2200_v44  ;;  %v2421_v38 = vmul.f32 2.0, %v2389_v10  ;;  %v4857_v28 = vld [vmem:[#allocation32_spill] sm:$0xff]  ;;  %s4726_s14 = scalar_lea.hbm %s4859_s16, %s2840_s23  ;;  %s3589_s10 = sshll.u32 %s3681_s29, 4  ;;  %s3590_s10 = int_to_ptr.vmem [resolvable:$false] %s3589_s10 }
 0x53b   : > { %v3398_v14 = vpop.eup %3397  ;;  %v2543_v11 = vadd.f32 %v2542_v40, %v2512_v18  ;;  %v2515_v41 = vadd.f32 %v2483_v45, %v2355_v20  ;;  %v2358_v55 = vmul.f32 %v3396_v58, %v2326_v31  ;;  %v2454_v57 = vsub.f32 1.0, %v3396_v58  ;;  %s3591_s22 = scalar_lea.vmem %s3590_s10, 32  ;;  %p3592_p3 = scmp.lt.s32.totalorder %s4728_s17, %s3590_s10 }
 0x53c   : > { %v2481_v48 = vmul.f32 %v2449_v12, %v2417_v34  ;;  %3409 = vrcp.f32 %v2203_v32  ;;  %v2201_v15 = vadd.f32 1.0, %v3398_v14  ;;  %v2330_v54 = vmul.f32 2.0, %v4855_v25  ;;  %p3593_p5 = scmp.lt.s32.totalorder %s3591_s22, %s3585_s24 }
 0x53d   : > { %v3400_v26 = vpop.eup %3399  ;;  %v2486_v0 = vmul.f32 %v2454_v57, %v2422_v61  ;;  %v2426_v56 = vmul.f32 2.0, %v2394_v7  ;;  %v2328_v23 = vmul.f32 2.0, %v4856_v19  ;;  %v2424_v16 = vmul.f32 2.0, %v2392_v35 }
 0x53e   : > { %v3402_v37 = vpop.eup %3401  ;;  %v2513_v51 = vadd.f32 %v2481_v48, %v2353_v47  ;;  %v2356_v50 = vmul.f32 %v3400_v26, %v2324_v4  ;;  %v2452_v6 = vsub.f32 1.0, %v3400_v26  ;;  %3411 = vrcp.f32 %v2201_v15  ;;  %p3594_p9 = por %p3593_p5, %p3592_p3 }
 0x53f   : > { %v3404_v60 = vpop.eup %3403  ;;  %v2518_v52 = vadd.f32 %v2486_v0, %v2358_v55  ;;  %v2359_v21 = vmul.f32 %v3402_v37, %v2327_v49  ;;  %v2455_v13 = vsub.f32 1.0, %v3402_v37  ;;  %v2331_v42 = vmul.f32 2.0, %v4857_v28 }
 0x540   : > { %v2544_v53 = vadd.f32 %v2543_v11, %v2513_v51  ;;  %v2484_v1 = vmul.f32 %v2452_v6, %v2420_v33  ;;  %v2357_v24 = vmul.f32 %v3404_v60, %v2325_v9  ;;  %v2453_v27 = vsub.f32 1.0, %v3404_v60  ;;  %p3595_p8 = pnand %p3594_p9, %p3588_p6 }
 0x541   : > { %v2487_v59 = vmul.f32 %v2455_v13, %v2423_v62  ;;  %v2427_v40 = vmul.f32 2.0, %v2395_v36  ;;  %v2425_v58 = vmul.f32 2.0, %v2393_v22 }
 0x542   : > { %v3406_v39 = vpop.eup %3405  ;;  %v2545_v43 = vadd.f32 %v2544_v53, %v4699_v46  ;;  %v2516_v2 = vadd.f32 %v2484_v1, %v2356_v50  ;;  %v2485_v31 = vmul.f32 %v2453_v27, %v2421_v38  ;;  %v2329_v46 = vmul.f32 2.0, %v4858_v5 }
 0x543   : > { %v2519_v4 = vadd.f32 %v2487_v59, %v2359_v21  ;;  %v2362_v30 = vmul.f32 %v3406_v39, %v2330_v54  ;;  %v2458_v63 = vsub.f32 1.0, %v3406_v39 }
 0x544   : > { %v3408_v20 = vpop.eup %3407  ;;  %v2546_v34 = vadd.f32 %v2545_v43, %v2515_v41  ;;  %v2517_v61 = vadd.f32 %v2485_v31, %v2357_v24 }
 0x545   : > { %v2490_v44 = vmul.f32 %v2458_v63, %v2426_v56  ;;  %v2360_v3 = vmul.f32 %v3408_v20, %v2328_v23  ;;  %v2456_v18 = vsub.f32 1.0, %v3408_v20 }
 0x546   : > { %v3410_v45 = vpop.eup %3409  ;;  %v2547_v32 = vadd.f32 %v2546_v34, %v2516_v2 }
 0x547   : > { %v2522_v17 = vadd.f32 %v2490_v44, %v2362_v30  ;;  %v2488_v49 = vmul.f32 %v2456_v18, %v2424_v16  ;;  %v2363_v47 = vmul.f32 %v3410_v45, %v2331_v42  ;;  %v2459_v12 = vsub.f32 1.0, %v3410_v45 }
 0x548   : > { %v3412_v8 = vpop.eup %3411  ;;  %v2548_v10 = vadd.f32 %v2547_v32, %v2517_v61 }
 0x549   : > { %v2520_v14 = vadd.f32 %v2488_v49, %v2360_v3  ;;  %v2491_v11 = vmul.f32 %v2459_v12, %v2427_v40  ;;  %v2361_v55 = vmul.f32 %v3412_v8, %v2329_v46  ;;  %v2457_v41 = vsub.f32 1.0, %v3412_v8 }
 0x54a   : > { %v2549_v57 = vadd.f32 %v2548_v10, %v2518_v52 }
 0x54b   : > { %v2489_v48 = vmul.f32 %v2457_v41, %v2425_v58  ;;  %v2523_v33 = vadd.f32 %v2491_v11, %v2363_v47 }
 0x54c   : > { %v2550_v15 = vadd.f32 %v2549_v57, %v2519_v4 }
 0x54d   : > { %v2521_v26 = vadd.f32 %v2489_v48, %v2361_v55 }
 0x54e   : > { %v2551_v29 = vadd.f32 %v2550_v15, %v2520_v14 }
 0x550   : > { %v2552_v9 = vadd.f32 %v2551_v29, %v2521_v26 }
 0x552   : > { %v2553_v0 = vadd.f32 %v2552_v9, %v2522_v17 }
 0x554   : > { %v2554_v62 = vadd.f32 %v2553_v0, %v2523_v33 }
 0x556   : > { %v2555_v38 = vrot.slane %v2554_v62, 4 }
 0x558   : > { %v2556_v37 = vadd.f32 %v2555_v38, %v2554_v62 }
 0x55a   : > { %v2557_v51 = vrot.slane %v2556_v37, 2 }
 0x55c   : > { %v2558_v50 = vadd.f32 %v2557_v51, %v2556_v37 }
 0x55e   : > { %v2559_v6 = vrot.slane %v2558_v50, 1 }
 0x560   : > { %v2560_v7 = vadd.f32 %v2559_v6, %v2558_v50 }
 0x562   : > { %v2561_v60 = vmul.f32 0.00390625, %v2560_v7 }
 0x564   : > { %2562 = vst [vmem:[%s555_s15] sm:$0x1] %v2561_v60 }
 0x565   : > { %3598 = shalt.err (!%p3595_p8)
}
 0x566   : > { %s3599_s9 = scalar_lea.hbm %s4726_s14, 16  ;;  %s3603_s25 = scalar_lea.hbm %s4859_s16, 32 }
 0x567   : > { %p3600_p11 = scmp.ne.s32.totalorder %s4726_s14, %s3599_s9  ;;  %p3604_p1 = scmp.lt.u32.totalorder %s4726_s14, %s4859_s16 }
 0x568   : > { %p3605_p2 = scmp.lt.u32.totalorder %s3603_s25, %s3599_s9  ;;  %p3607_p0 = scmp.lt.u32.totalorder %s3599_s9, %s4726_s14 }
 0x569   : > { %p3601_p7 = pnand %p3600_p11, %p3923_p10 }
 0x56a   : > { %p3606_p13 = por %p3605_p2, %p3604_p1 }
 0x56b   : > { %p3602_p12 = pneg %p3601_p7 }
 0x56c   : > { %p3608_p4 = por %p3607_p0, %p3606_p13 }
 0x56e   : > { %p3609_p6 = pnand %p3608_p4, %p3602_p12 }
 0x570   : > { %3612 = shalt.err (!%p3609_p6)
}
 0x571   : > { %3140 = dma.vmem_to_hbm [thread:$0]  (%p3923_p10), %s4728_s17, 16, %s4726_s14, %s2564_s19  }
 0x572 PF: > { %s4860_s20 = sld [smem:[#allocation22_spill]]  ;;  %s4861_s8 = sld [smem:[#allocation23_spill]] }
 0x573   : > { %p4863_p5 = scmp.ge.s32.totalorder %s3667_s28, 2 }
 0x578   : > { %s2588_s23 = sand.u32 1, %s4860_s20   ;;  %p4862_p3 = scmp.ne.s32.totalorder %s4861_s8, 0 }
 0x579   : > { %s2589_s15 = scalar_lea.sflag [#allocation6], %s2588_s23 }
 0x57a   : > { %p3163_p9 = pnand %p4863_p5, %p4862_p3 }
 0x57c   : > { %3650 = dma.done.wait (!%p3163_p9), %s2589_s15, 16  }
 0x57d   : > { %3652 = vsyncadd (!%p3163_p9), %s2589_s15, 4294967280  ;;  %p31_p8 = scmp.ge.s32.totalorder %s3913_s13, 4   ;;  %s4864_s25 = smov %s3659_s26 }
 0x57e   : > { %s4865_s26 = smov %s3663_s27  ;;  %s4866_s27 = smov %s3929_s30 }
 0x57f   : > { %s4867_s28 = smov %s3913_s13  ;;  %33 = sbr.rel (!%p31_p8) target bundleno = 19 (0x13), region = 146 }
 0x586   :  { %2593 = vsyncpa [#allocation5], 1 }
 0x587   :  { %2595 = vsyncpa [#allocation5 + $0x1], 1 }
 0x588   :  { %2596 = vsyncpa [#allocation8], 1 }
 0x589   :  { %2598 = vsyncpa [#allocation8 + $0x1], 1 }
 0x58a   :  { %2599 = vsyncpa [#allocation11], 1 }
 0x58b   :  { %2600 = vsyncpa [#allocation14], 1 }
 0x58c   :  { %2601 = vsyncpa [#allocation6], 1 }
 0x58d   :  { %2603 = vsyncpa [#allocation6 + $0x1], 1 }

</bundles_post_ra>
